<compile_context>
chip_gen: v7x
topology: tpu7x:2x2x1
jax: 0.10.0
libtpu: 0.0.40
codegen_flags: <defaults>
</compile_context>

<pallas_src>
import numpy as np
import jax
import jax.numpy as jnp
from jax.experimental import pallas as pl
from jax.experimental.pallas import tpu as pltpu

# ----------------------------- model config -----------------------------
B, S = 2, 8
VOCAB, PAD_IDX = 16, 0
D_MODEL, D_INNER = 32, 64
N_LAYERS, N_HEAD, D_K, D_V = 2, 2, 16, 16
N_POSITION = 200
EPS = 1e-6

_VMEM = pl.BlockSpec(memory_space=pltpu.MemorySpace.VMEM)


# ----------------------------- fused Pallas kernel -----------------------------
def _layernorm(x, g, b):
    # x: (B*S, D), g/b: (1, D)
    mean = jnp.mean(x, axis=-1, keepdims=True)
    var = jnp.mean((x - mean) ** 2, axis=-1, keepdims=True)
    return (x - mean) * jax.lax.rsqrt(var + EPS) * g + b          # rsqrt -> EUP


def fused_encoder_kernel(x_ref, pos_ref, bias_ref, ln0_ref, lnv_ref, ffb1_ref,
                         wqkv_ref, wo_ref, w1_ref, w2_ref, out_ref):
    """Whole encoder in one kernel; everything resident in VMEM at this size.

    x_ref   : (B, S, D)              token embeddings
    pos_ref : (S, D)                 sinusoidal positional table slice
    bias_ref: (B, 1, S)              additive attention-mask bias (0 keep, -1e9 pad)
    ln0_ref : (2, D)                 input LayerNorm [gamma; beta]
    lnv_ref : (L, 5, D)              per-layer [g1; b1; g2; b2; bb2]
    ffb1_ref: (L, 1, D_INNER)        per-layer FFN first bias
    wqkv_ref: (L, D, 3*H*d_k)        fused q|k|v weights (1/sqrt(d_k) folded into q)
    wo_ref  : (L, H*d_v, D)          attention output projection
    w1_ref  : (L, D, D_INNER)        FFN weights
    w2_ref  : (L, D_INNER, D)
    out_ref : (B, S, D)
    """
    b_sz, s_len, d_model = x_ref.shape
    bs = b_sz * s_len
    n_layers = wqkv_ref.shape[0]
    hdk = wqkv_ref.shape[2] // 3          # H * d_k

    bias = bias_ref[...]                  # (B, 1, S)

    # positional encoding + input LayerNorm (scale_emb=False, dropout=identity)
    x = x_ref[...] + pos_ref[...][None, :, :]                     # (B, S, D)
    x = x.reshape(bs, d_model)                                    # (B*S, D)
    ln0 = ln0_ref[...]
    x = _layernorm(x, ln0[0:1, :], ln0[1:2, :])

    for l in range(n_layers):                                     # static unroll
        wqkv = wqkv_ref[l]                # (D, 3*H*d_k)
        wo = wo_ref[l]                    # (H*d_v, D)
        w1 = w1_ref[l]                    # (D, D_INNER)
        w2 = w2_ref[l]                    # (D_INNER, D)
        lnv = lnv_ref[l]                  # (5, D)
        g1, b1_, g2, b2_, bb2 = (lnv[0:1], lnv[1:2], lnv[2:3], lnv[3:4], lnv[4:5])
        bb1 = ffb1_ref[l]                 # (1, D_INNER)

        # ---- multi-head self-attention ----
        residual = x
        # one fused 2-D projection matmul for q|k|v
        qkv = jnp.dot(x, wqkv, preferred_element_type=jnp.float32)   # (B*S, 3*H*d_k)
        qkv = qkv.reshape(b_sz, s_len, 3 * hdk)                      # (B, S, 3*H*d_k)
        heads = []
        for h in range(N_HEAD):           # only the (S,S) matmuls are per-head
            qh = qkv[:, :, h * D_K:(h + 1) * D_K]                              # (B,S,dk)
            kh = qkv[:, :, hdk + h * D_K:hdk + (h + 1) * D_K]                  # (B,S,dk)
            vh = qkv[:, :, 2 * hdk + h * D_V:2 * hdk + (h + 1) * D_V]          # (B,S,dv)
            sc = jnp.einsum('bqd,bkd->bqk', qh, kh,
                            preferred_element_type=jnp.float32)               # (B,S,S)
            sc = sc + bias                                      # (B,1,S) broadcasts
            m = jnp.max(sc, axis=-1, keepdims=True)
            e = jnp.exp(sc - m)
            p = e / jnp.sum(e, axis=-1, keepdims=True)          # exact softmax (f32)
            heads.append(jnp.einsum('bqk,bkd->bqd', p, vh,
                                    preferred_element_type=jnp.float32))      # (B,S,dv)
        o = jnp.concatenate(heads, axis=-1).reshape(bs, N_HEAD * D_V)  # (B*S, H*dv)
        # single 2-D output projection matmul
        attn = jnp.dot(o, wo, preferred_element_type=jnp.float32)      # (B*S, D)
        x = _layernorm(attn + residual, g1, b1_)

        # ---- position-wise feed-forward (2-D matmuls on (B*S, .)) ----
        residual = x
        h1 = jnp.dot(x, w1, preferred_element_type=jnp.float32) + bb1  # (B*S, D_INNER)
        h1 = jnp.maximum(h1, 0.0)
        h2 = jnp.dot(h1, w2, preferred_element_type=jnp.float32) + bb2  # (B*S, D)
        x = _layernorm(h2 + residual, g2, b2_)

    out_ref[...] = x.reshape(b_sz, s_len, d_model)


# ----------------------------- wrappers -----------------------------
@jax.jit
def encoder_forward(src_seq, src_mask, kparams):
    """kparams = preprocess_params(init_params(...))."""
    emb, pos_tab, ln0, lnv, ffb1, wqkv, wo, w1, w2 = kparams
    b_sz, s_len = src_seq.shape
    x = jnp.take(emb, src_seq, axis=0)            # embedding gather (wrapper glue)
    pos = pos_tab[:s_len]                         # (S, D)
    bias = (src_mask - 1.0) * 1e9                 # (B, 1, S) additive mask bias
    call = pl.pallas_call(
        fused_encoder_kernel,
        out_shape=jax.ShapeDtypeStruct((b_sz, s_len, D_MODEL), jnp.float32),
        in_specs=[_VMEM] * 10,
        out_specs=_VMEM,
    )
    return call(x, pos, bias, ln0, lnv, ffb1, wqkv, wo, w1, w2)


def preprocess_params(params):
    """One-time parameter transform for the kernel (zero per-call cost):
       fuse q|k|v weights (with 1/sqrt(d_k) folded into the q columns) and stack
       every per-layer tensor into one slab per kind so the kernel takes only a
       handful of input refs."""
    emb, pos_tab, ln_g, ln_b, layers = params
    scale = 1.0 / np.sqrt(D_K)
    ln0 = jnp.concatenate([ln_g, ln_b], axis=0)                       # (2, D)
    wqkv_l, wo_l, w1_l, w2_l, lnv_l, ffb1_l = [], [], [], [], [], []
    for (wq, wk, wv, wo, g1, b1, w1, bb1, w2, bb2, g2, b2) in layers:
        wqkv_l.append(jnp.concatenate([wq * scale, wk, wv], axis=1))  # (D, 3*H*dk)
        wo_l.append(wo)                                               # (H*dv, D)
        w1_l.append(w1)                                               # (D, D_INNER)
        w2_l.append(w2)                                               # (D_INNER, D)
        lnv_l.append(jnp.concatenate([g1, b1, g2, b2, bb2], axis=0))  # (5, D)
        ffb1_l.append(bb1)                                            # (1, D_INNER)
    return (emb, pos_tab, ln0,
            jnp.stack(lnv_l), jnp.stack(ffb1_l),
            jnp.stack(wqkv_l), jnp.stack(wo_l),
            jnp.stack(w1_l), jnp.stack(w2_l))


# ----------------------------- pure-JAX reference -----------------------------
def layernorm_ref(x, g, b):
    mean = jnp.mean(x, axis=-1, keepdims=True)
    var = jnp.mean((x - mean) ** 2, axis=-1, keepdims=True)
    return (x - mean) / jnp.sqrt(var + EPS) * g + b


def encoder_reference(src_seq, src_mask, params):
    emb, pos_tab, ln_g, ln_b, layers = params
    x = jnp.take(emb, src_seq, axis=0)
    x = x + pos_tab[None, :src_seq.shape[1]]
    x = layernorm_ref(x, ln_g[0], ln_b[0])
    for (wq, wk, wv, wo, g1, b1, w1, bb1, w2, bb2, g2, b2) in layers:
        residual = x
        Bn, Sn, _ = x.shape
        q = (x @ wq).reshape(Bn, Sn, N_HEAD, D_K).transpose(0, 2, 1, 3)
        k = (x @ wk).reshape(Bn, Sn, N_HEAD, D_K).transpose(0, 2, 1, 3)
        v = (x @ wv).reshape(Bn, Sn, N_HEAD, D_V).transpose(0, 2, 1, 3)
        s = jnp.einsum('bhqd,bhkd->bhqk', q, k) / (D_K ** 0.5)
        s = jnp.where(src_mask[:, None] > 0, s, -1e9)
        p = jax.nn.softmax(s, axis=-1)
        o = jnp.einsum('bhqk,bhkd->bhqd', p, v).transpose(0, 2, 1, 3).reshape(Bn, Sn, -1)
        x = layernorm_ref(o @ wo + residual, g1[0], b1[0])
        residual = x
        h = jnp.maximum(x @ w1 + bb1[0], 0.0)
        x = layernorm_ref(h @ w2 + bb2[0] + residual, g2[0], b2[0])
    return x


# ----------------------------- parameter init -----------------------------
def sinusoid_table(n_position, d_hid):
    pos = np.arange(n_position)[:, None].astype(np.float64)
    hid = np.arange(d_hid)[None, :]
    angle = pos / np.power(10000, 2 * (hid // 2) / d_hid)
    tab = np.zeros((n_position, d_hid))
    tab[:, 0::2] = np.sin(angle[:, 0::2])
    tab[:, 1::2] = np.cos(angle[:, 1::2])
    return jnp.asarray(tab, jnp.float32)


def init_params(key):
    kemb, *lk = jax.random.split(key, 1 + N_LAYERS)
    emb = (jax.random.normal(kemb, (VOCAB, D_MODEL), jnp.float32) * 0.1
           ).at[PAD_IDX].set(0.0)
    pos_tab = sinusoid_table(N_POSITION, D_MODEL)
    ln_g = jnp.ones((1, D_MODEL), jnp.float32)
    ln_b = jnp.zeros((1, D_MODEL), jnp.float32)
    layers = []
    for l in range(N_LAYERS):
        ks = jax.random.split(lk[l], 6)
        wq = jax.random.normal(ks[0], (D_MODEL, N_HEAD * D_K), jnp.float32) * 0.1
        wk = jax.random.normal(ks[1], (D_MODEL, N_HEAD * D_K), jnp.float32) * 0.1
        wv = jax.random.normal(ks[2], (D_MODEL, N_HEAD * D_V), jnp.float32) * 0.1
        wo = jax.random.normal(ks[3], (N_HEAD * D_V, D_MODEL), jnp.float32) * 0.1
        w1 = jax.random.normal(ks[4], (D_MODEL, D_INNER), jnp.float32) * 0.1
        bb1 = jnp.zeros((1, D_INNER), jnp.float32)
        w2 = jax.random.normal(ks[5], (D_INNER, D_MODEL), jnp.float32) * 0.1
        bb2 = jnp.zeros((1, D_MODEL), jnp.float32)
        g1 = jnp.ones((1, D_MODEL), jnp.float32); b1 = jnp.zeros((1, D_MODEL), jnp.float32)
        g2 = jnp.ones((1, D_MODEL), jnp.float32); b2 = jnp.zeros((1, D_MODEL), jnp.float32)
        layers.append((wq, wk, wv, wo, g1, b1, w1, bb1, w2, bb2, g2, b2))
    return emb, pos_tab, ln_g, ln_b, layers


# ----------------------------- main -----------------------------
if __name__ == "__main__":
    key = jax.random.PRNGKey(0)
    k_tok, k_par = jax.random.split(key)
    src_seq = jax.random.randint(k_tok, (B, S), 0, VOCAB, dtype=jnp.int32)
    src_mask = (src_seq != PAD_IDX).astype(jnp.float32)[:, None, :]   # (B, 1, S)

    params = init_params(k_par)
    kparams = preprocess_params(params)     # one-time weight transform for the kernel

    out = encoder_forward(src_seq, src_mask, kparams)
    out = jax.block_until_ready(out)

    ref = encoder_reference(src_seq, src_mask, params)
    np.testing.assert_allclose(np.asarray(out), np.asarray(ref), atol=2e-2, rtol=2e-2)
    assert out.shape == (B, S, D_MODEL) and np.all(np.isfinite(np.asarray(out)))
    print("KERNEL_OK")
</pallas_src>

<mosaic_0001>
module attributes {stable_mosaic.version = 11 : i64} {
  func.func @fused_encoder_kernel(%arg0: memref<2x8x32xf32, #tpu.memory_space<vmem>>, %arg1: memref<8x32xf32, #tpu.memory_space<vmem>>, %arg2: memref<2x1x8xf32, #tpu.memory_space<vmem>>, %arg3: memref<2x32xf32, #tpu.memory_space<vmem>>, %arg4: memref<2x5x32xf32, #tpu.memory_space<vmem>>, %arg5: memref<2x1x64xf32, #tpu.memory_space<vmem>>, %arg6: memref<2x32x96xf32, #tpu.memory_space<vmem>>, %arg7: memref<2x32x32xf32, #tpu.memory_space<vmem>>, %arg8: memref<2x32x64xf32, #tpu.memory_space<vmem>>, %arg9: memref<2x64x32xf32, #tpu.memory_space<vmem>>, %arg10: memref<2x8x32xf32, #tpu.memory_space<vmem>>) attributes {dimension_semantics = [], scalar_prefetch = 0 : i64, scratch_operands = 0 : i64, tpu.core_type = #tpu.core_type<tc>} {
    %c0 = arith.constant 0 : index
    %c0_0 = arith.constant 0 : index
    %c0_1 = arith.constant 0 : index
    %0 = vector.load %arg2[%c0, %c0_0, %c0_1] : memref<2x1x8xf32, #tpu.memory_space<vmem>>, vector<2x1x8xf32>
    %c0_2 = arith.constant 0 : index
    %c0_3 = arith.constant 0 : index
    %c0_4 = arith.constant 0 : index
    %1 = vector.load %arg0[%c0_2, %c0_3, %c0_4] : memref<2x8x32xf32, #tpu.memory_space<vmem>>, vector<2x8x32xf32>
    %c0_5 = arith.constant 0 : index
    %c0_6 = arith.constant 0 : index
    %2 = vector.load %arg1[%c0_5, %c0_6] : memref<8x32xf32, #tpu.memory_space<vmem>>, vector<8x32xf32>
    %3 = vector.shape_cast %2 : vector<8x32xf32> to vector<1x8x32xf32>
    %4 = vector.broadcast %3 : vector<1x8x32xf32> to vector<2x8x32xf32>
    %5 = arith.addf %1, %4 : vector<2x8x32xf32>
    %6 = vector.shape_cast %5 : vector<2x8x32xf32> to vector<16x32xf32>
    %c0_7 = arith.constant 0 : index
    %c0_8 = arith.constant 0 : index
    %7 = vector.load %arg3[%c0_7, %c0_8] : memref<2x32xf32, #tpu.memory_space<vmem>>, vector<2x32xf32>
    %8 = vector.extract_strided_slice %7 {offsets = [0, 0], sizes = [1, 32], strides = [1, 1]} : vector<2x32xf32> to vector<1x32xf32>
    %9 = vector.extract_strided_slice %7 {offsets = [1, 0], sizes = [1, 32], strides = [1, 1]} : vector<2x32xf32> to vector<1x32xf32>
    %cst = arith.constant dense<0.000000e+00> : vector<16xf32>
    %10 = vector.multi_reduction <add>, %6, %cst [1] : vector<16x32xf32> to vector<16xf32>
    %11 = vector.shape_cast %10 : vector<16xf32> to vector<16x1xf32>
    %cst_9 = arith.constant 3.200000e+01 : f32
    %12 = vector.broadcast %cst_9 : f32 to vector<16x1xf32>
    %13 = arith.divf %11, %12 : vector<16x1xf32>
    %14 = vector.broadcast %13 : vector<16x1xf32> to vector<16x32xf32>
    %15 = arith.subf %6, %14 : vector<16x32xf32>
    %16 = arith.mulf %15, %15 : vector<16x32xf32>
    %cst_10 = arith.constant dense<0.000000e+00> : vector<16xf32>
    %17 = vector.multi_reduction <add>, %16, %cst_10 [1] : vector<16x32xf32> to vector<16xf32>
    %18 = vector.shape_cast %17 : vector<16xf32> to vector<16x1xf32>
    %cst_11 = arith.constant 3.200000e+01 : f32
    %19 = vector.broadcast %cst_11 : f32 to vector<16x1xf32>
    %20 = arith.divf %18, %19 : vector<16x1xf32>
    %21 = vector.broadcast %13 : vector<16x1xf32> to vector<16x32xf32>
    %22 = arith.subf %6, %21 : vector<16x32xf32>
    %cst_12 = arith.constant 9.99999997E-7 : f32
    %23 = vector.broadcast %cst_12 : f32 to vector<16x1xf32>
    %24 = arith.addf %20, %23 : vector<16x1xf32>
    %25 = math.rsqrt %24 : vector<16x1xf32>
    %26 = vector.broadcast %25 : vector<16x1xf32> to vector<16x32xf32>
    %27 = arith.mulf %22, %26 : vector<16x32xf32>
    %28 = vector.broadcast %8 : vector<1x32xf32> to vector<16x32xf32>
    %29 = arith.mulf %27, %28 : vector<16x32xf32>
    %30 = vector.broadcast %9 : vector<1x32xf32> to vector<16x32xf32>
    %31 = arith.addf %29, %30 : vector<16x32xf32>
    %c0_13 = arith.constant 0 : index
    %c0_14 = arith.constant 0 : index
    %c0_15 = arith.constant 0 : index
    %32 = vector.load %arg6[%c0_13, %c0_14, %c0_15] : memref<2x32x96xf32, #tpu.memory_space<vmem>>, vector<1x32x96xf32>
    %33 = vector.shape_cast %32 : vector<1x32x96xf32> to vector<32x96xf32>
    %c0_16 = arith.constant 0 : index
    %c0_17 = arith.constant 0 : index
    %c0_18 = arith.constant 0 : index
    %34 = vector.load %arg7[%c0_16, %c0_17, %c0_18] : memref<2x32x32xf32, #tpu.memory_space<vmem>>, vector<1x32x32xf32>
    %35 = vector.shape_cast %34 : vector<1x32x32xf32> to vector<32x32xf32>
    %c0_19 = arith.constant 0 : index
    %c0_20 = arith.constant 0 : index
    %c0_21 = arith.constant 0 : index
    %36 = vector.load %arg8[%c0_19, %c0_20, %c0_21] : memref<2x32x64xf32, #tpu.memory_space<vmem>>, vector<1x32x64xf32>
    %37 = vector.shape_cast %36 : vector<1x32x64xf32> to vector<32x64xf32>
    %c0_22 = arith.constant 0 : index
    %c0_23 = arith.constant 0 : index
    %c0_24 = arith.constant 0 : index
    %38 = vector.load %arg9[%c0_22, %c0_23, %c0_24] : memref<2x64x32xf32, #tpu.memory_space<vmem>>, vector<1x64x32xf32>
    %39 = vector.shape_cast %38 : vector<1x64x32xf32> to vector<64x32xf32>
    %c0_25 = arith.constant 0 : index
    %c0_26 = arith.constant 0 : index
    %c0_27 = arith.constant 0 : index
    %40 = vector.load %arg4[%c0_25, %c0_26, %c0_27] : memref<2x5x32xf32, #tpu.memory_space<vmem>>, vector<1x5x32xf32>
    %41 = vector.shape_cast %40 : vector<1x5x32xf32> to vector<5x32xf32>
    %42 = vector.extract_strided_slice %41 {offsets = [0, 0], sizes = [1, 32], strides = [1, 1]} : vector<5x32xf32> to vector<1x32xf32>
    %43 = vector.extract_strided_slice %41 {offsets = [1, 0], sizes = [1, 32], strides = [1, 1]} : vector<5x32xf32> to vector<1x32xf32>
    %44 = vector.extract_strided_slice %41 {offsets = [2, 0], sizes = [1, 32], strides = [1, 1]} : vector<5x32xf32> to vector<1x32xf32>
    %45 = vector.extract_strided_slice %41 {offsets = [3, 0], sizes = [1, 32], strides = [1, 1]} : vector<5x32xf32> to vector<1x32xf32>
    %46 = vector.extract_strided_slice %41 {offsets = [4, 0], sizes = [1, 32], strides = [1, 1]} : vector<5x32xf32> to vector<1x32xf32>
    %c0_28 = arith.constant 0 : index
    %c0_29 = arith.constant 0 : index
    %c0_30 = arith.constant 0 : index
    %47 = vector.load %arg5[%c0_28, %c0_29, %c0_30] : memref<2x1x64xf32, #tpu.memory_space<vmem>>, vector<1x1x64xf32>
    %48 = vector.shape_cast %47 : vector<1x1x64xf32> to vector<1x64xf32>
    %cst_31 = arith.constant dense<0.000000e+00> : vector<16x96xf32>
    %49 = tpu.matmul %31, %33, %cst_31 {dimension_numbers = #tpu.dot_dimension_numbers<[1], [0], [0], [1], [0, 0, 1, 1], [], []>} : vector<16x32xf32>, vector<32x96xf32>, vector<16x96xf32> -> vector<16x96xf32>
    %50 = vector.shape_cast %49 : vector<16x96xf32> to vector<2x8x96xf32>
    %51 = vector.extract_strided_slice %50 {offsets = [0, 0, 0], sizes = [2, 8, 16], strides = [1, 1, 1]} : vector<2x8x96xf32> to vector<2x8x16xf32>
    %52 = vector.extract_strided_slice %50 {offsets = [0, 0, 32], sizes = [2, 8, 16], strides = [1, 1, 1]} : vector<2x8x96xf32> to vector<2x8x16xf32>
    %53 = vector.extract_strided_slice %50 {offsets = [0, 0, 64], sizes = [2, 8, 16], strides = [1, 1, 1]} : vector<2x8x96xf32> to vector<2x8x16xf32>
    "tpu.trace_start"() <{level = 10 : i32, message = "bqd,bkd->bqk"}> : () -> ()
    %cst_32 = arith.constant dense<0.000000e+00> : vector<2x8x8xf32>
    %54 = tpu.matmul %51, %52, %cst_32 {dimension_numbers = #tpu.dot_dimension_numbers<[2], [2], [1], [1], [0, 0, 0, 1, 1, 1], [0], [0]>} : vector<2x8x16xf32>, vector<2x8x16xf32>, vector<2x8x8xf32> -> vector<2x8x8xf32>
    "tpu.trace_stop"() : () -> ()
    %55 = vector.broadcast %0 : vector<2x1x8xf32> to vector<2x8x8xf32>
    %56 = arith.addf %54, %55 : vector<2x8x8xf32>
    %cst_33 = arith.constant dense<0xFF800000> : vector<2x8xf32>
    %57 = vector.multi_reduction <maximumf>, %56, %cst_33 [2] : vector<2x8x8xf32> to vector<2x8xf32>
    %58 = vector.shape_cast %57 : vector<2x8xf32> to vector<2x8x1xf32>
    %59 = vector.broadcast %58 : vector<2x8x1xf32> to vector<2x8x8xf32>
    %60 = arith.subf %56, %59 : vector<2x8x8xf32>
    %61 = math.exp %60 : vector<2x8x8xf32>
    %cst_34 = arith.constant dense<0.000000e+00> : vector<2x8xf32>
    %62 = vector.multi_reduction <add>, %61, %cst_34 [2] : vector<2x8x8xf32> to vector<2x8xf32>
    %63 = vector.shape_cast %62 : vector<2x8xf32> to vector<2x8x1xf32>
    %64 = vector.broadcast %63 : vector<2x8x1xf32> to vector<2x8x8xf32>
    %65 = arith.divf %61, %64 : vector<2x8x8xf32>
    "tpu.trace_start"() <{level = 10 : i32, message = "bqk,bkd->bqd"}> : () -> ()
    %cst_35 = arith.constant dense<0.000000e+00> : vector<2x8x16xf32>
    %66 = tpu.matmul %65, %53, %cst_35 {dimension_numbers = #tpu.dot_dimension_numbers<[2], [1], [1], [2], [0, 0, 0, 1, 1, 2], [0], [0]>} : vector<2x8x8xf32>, vector<2x8x16xf32>, vector<2x8x16xf32> -> vector<2x8x16xf32>
    "tpu.trace_stop"() : () -> ()
    %67 = vector.extract_strided_slice %50 {offsets = [0, 0, 16], sizes = [2, 8, 16], strides = [1, 1, 1]} : vector<2x8x96xf32> to vector<2x8x16xf32>
    %68 = vector.extract_strided_slice %50 {offsets = [0, 0, 48], sizes = [2, 8, 16], strides = [1, 1, 1]} : vector<2x8x96xf32> to vector<2x8x16xf32>
    %69 = vector.extract_strided_slice %50 {offsets = [0, 0, 80], sizes = [2, 8, 16], strides = [1, 1, 1]} : vector<2x8x96xf32> to vector<2x8x16xf32>
    "tpu.trace_start"() <{level = 10 : i32, message = "bqd,bkd->bqk"}> : () -> ()
    %cst_36 = arith.constant dense<0.000000e+00> : vector<2x8x8xf32>
    %70 = tpu.matmul %67, %68, %cst_36 {dimension_numbers = #tpu.dot_dimension_numbers<[2], [2], [1], [1], [0, 0, 0, 1, 1, 1], [0], [0]>} : vector<2x8x16xf32>, vector<2x8x16xf32>, vector<2x8x8xf32> -> vector<2x8x8xf32>
    "tpu.trace_stop"() : () -> ()
    %71 = vector.broadcast %0 : vector<2x1x8xf32> to vector<2x8x8xf32>
    %72 = arith.addf %70, %71 : vector<2x8x8xf32>
    %cst_37 = arith.constant dense<0xFF800000> : vector<2x8xf32>
    %73 = vector.multi_reduction <maximumf>, %72, %cst_37 [2] : vector<2x8x8xf32> to vector<2x8xf32>
    %74 = vector.shape_cast %73 : vector<2x8xf32> to vector<2x8x1xf32>
    %75 = vector.broadcast %74 : vector<2x8x1xf32> to vector<2x8x8xf32>
    %76 = arith.subf %72, %75 : vector<2x8x8xf32>
    %77 = math.exp %76 : vector<2x8x8xf32>
    %cst_38 = arith.constant dense<0.000000e+00> : vector<2x8xf32>
    %78 = vector.multi_reduction <add>, %77, %cst_38 [2] : vector<2x8x8xf32> to vector<2x8xf32>
    %79 = vector.shape_cast %78 : vector<2x8xf32> to vector<2x8x1xf32>
    %80 = vector.broadcast %79 : vector<2x8x1xf32> to vector<2x8x8xf32>
    %81 = arith.divf %77, %80 : vector<2x8x8xf32>
    "tpu.trace_start"() <{level = 10 : i32, message = "bqk,bkd->bqd"}> : () -> ()
    %cst_39 = arith.constant dense<0.000000e+00> : vector<2x8x16xf32>
    %82 = tpu.matmul %81, %69, %cst_39 {dimension_numbers = #tpu.dot_dimension_numbers<[2], [1], [1], [2], [0, 0, 0, 1, 1, 2], [0], [0]>} : vector<2x8x8xf32>, vector<2x8x16xf32>, vector<2x8x16xf32> -> vector<2x8x16xf32>
    "tpu.trace_stop"() : () -> ()
    %83 = tpu.concatenate %66, %82 in 2 : vector<2x8x16xf32>, vector<2x8x16xf32> -> vector<2x8x32xf32>
    %84 = vector.shape_cast %83 : vector<2x8x32xf32> to vector<16x32xf32>
    %cst_40 = arith.constant dense<0.000000e+00> : vector<16x32xf32>
    %85 = tpu.matmul %84, %35, %cst_40 {dimension_numbers = #tpu.dot_dimension_numbers<[1], [0], [0], [1], [0, 0, 1, 1], [], []>} : vector<16x32xf32>, vector<32x32xf32>, vector<16x32xf32> -> vector<16x32xf32>
    %86 = arith.addf %85, %31 : vector<16x32xf32>
    %cst_41 = arith.constant dense<0.000000e+00> : vector<16xf32>
    %87 = vector.multi_reduction <add>, %86, %cst_41 [1] : vector<16x32xf32> to vector<16xf32>
    %88 = vector.shape_cast %87 : vector<16xf32> to vector<16x1xf32>
    %cst_42 = arith.constant 3.200000e+01 : f32
    %89 = vector.broadcast %cst_42 : f32 to vector<16x1xf32>
    %90 = arith.divf %88, %89 : vector<16x1xf32>
    %91 = vector.broadcast %90 : vector<16x1xf32> to vector<16x32xf32>
    %92 = arith.subf %86, %91 : vector<16x32xf32>
    %93 = arith.mulf %92, %92 : vector<16x32xf32>
    %cst_43 = arith.constant dense<0.000000e+00> : vector<16xf32>
    %94 = vector.multi_reduction <add>, %93, %cst_43 [1] : vector<16x32xf32> to vector<16xf32>
    %95 = vector.shape_cast %94 : vector<16xf32> to vector<16x1xf32>
    %cst_44 = arith.constant 3.200000e+01 : f32
    %96 = vector.broadcast %cst_44 : f32 to vector<16x1xf32>
    %97 = arith.divf %95, %96 : vector<16x1xf32>
    %98 = vector.broadcast %90 : vector<16x1xf32> to vector<16x32xf32>
    %99 = arith.subf %86, %98 : vector<16x32xf32>
    %cst_45 = arith.constant 9.99999997E-7 : f32
    %100 = vector.broadcast %cst_45 : f32 to vector<16x1xf32>
    %101 = arith.addf %97, %100 : vector<16x1xf32>
    %102 = math.rsqrt %101 : vector<16x1xf32>
    %103 = vector.broadcast %102 : vector<16x1xf32> to vector<16x32xf32>
    %104 = arith.mulf %99, %103 : vector<16x32xf32>
    %105 = vector.broadcast %42 : vector<1x32xf32> to vector<16x32xf32>
    %106 = arith.mulf %104, %105 : vector<16x32xf32>
    %107 = vector.broadcast %43 : vector<1x32xf32> to vector<16x32xf32>
    %108 = arith.addf %106, %107 : vector<16x32xf32>
    %cst_46 = arith.constant dense<0.000000e+00> : vector<16x64xf32>
    %109 = tpu.matmul %108, %37, %cst_46 {dimension_numbers = #tpu.dot_dimension_numbers<[1], [0], [0], [1], [0, 0, 1, 1], [], []>} : vector<16x32xf32>, vector<32x64xf32>, vector<16x64xf32> -> vector<16x64xf32>
    %110 = vector.broadcast %48 : vector<1x64xf32> to vector<16x64xf32>
    %111 = arith.addf %109, %110 : vector<16x64xf32>
    %cst_47 = arith.constant 0.000000e+00 : f32
    %112 = vector.broadcast %cst_47 : f32 to vector<16x64xf32>
    %113 = arith.maximumf %111, %112 : vector<16x64xf32>
    %cst_48 = arith.constant dense<0.000000e+00> : vector<16x32xf32>
    %114 = tpu.matmul %113, %39, %cst_48 {dimension_numbers = #tpu.dot_dimension_numbers<[1], [0], [0], [1], [0, 0, 1, 1], [], []>} : vector<16x64xf32>, vector<64x32xf32>, vector<16x32xf32> -> vector<16x32xf32>
    %115 = vector.broadcast %46 : vector<1x32xf32> to vector<16x32xf32>
    %116 = arith.addf %114, %115 : vector<16x32xf32>
    %117 = arith.addf %116, %108 : vector<16x32xf32>
    %cst_49 = arith.constant dense<0.000000e+00> : vector<16xf32>
    %118 = vector.multi_reduction <add>, %117, %cst_49 [1] : vector<16x32xf32> to vector<16xf32>
    %119 = vector.shape_cast %118 : vector<16xf32> to vector<16x1xf32>
    %cst_50 = arith.constant 3.200000e+01 : f32
    %120 = vector.broadcast %cst_50 : f32 to vector<16x1xf32>
    %121 = arith.divf %119, %120 : vector<16x1xf32>
    %122 = vector.broadcast %121 : vector<16x1xf32> to vector<16x32xf32>
    %123 = arith.subf %117, %122 : vector<16x32xf32>
    %124 = arith.mulf %123, %123 : vector<16x32xf32>
    %cst_51 = arith.constant dense<0.000000e+00> : vector<16xf32>
    %125 = vector.multi_reduction <add>, %124, %cst_51 [1] : vector<16x32xf32> to vector<16xf32>
    %126 = vector.shape_cast %125 : vector<16xf32> to vector<16x1xf32>
    %cst_52 = arith.constant 3.200000e+01 : f32
    %127 = vector.broadcast %cst_52 : f32 to vector<16x1xf32>
    %128 = arith.divf %126, %127 : vector<16x1xf32>
    %129 = vector.broadcast %121 : vector<16x1xf32> to vector<16x32xf32>
    %130 = arith.subf %117, %129 : vector<16x32xf32>
    %cst_53 = arith.constant 9.99999997E-7 : f32
    %131 = vector.broadcast %cst_53 : f32 to vector<16x1xf32>
    %132 = arith.addf %128, %131 : vector<16x1xf32>
    %133 = math.rsqrt %132 : vector<16x1xf32>
    %134 = vector.broadcast %133 : vector<16x1xf32> to vector<16x32xf32>
    %135 = arith.mulf %130, %134 : vector<16x32xf32>
    %136 = vector.broadcast %44 : vector<1x32xf32> to vector<16x32xf32>
    %137 = arith.mulf %135, %136 : vector<16x32xf32>
    %138 = vector.broadcast %45 : vector<1x32xf32> to vector<16x32xf32>
    %139 = arith.addf %137, %138 : vector<16x32xf32>
    %c1 = arith.constant 1 : index
    %c0_54 = arith.constant 0 : index
    %c0_55 = arith.constant 0 : index
    %140 = vector.load %arg6[%c1, %c0_54, %c0_55] : memref<2x32x96xf32, #tpu.memory_space<vmem>>, vector<1x32x96xf32>
    %141 = vector.shape_cast %140 : vector<1x32x96xf32> to vector<32x96xf32>
    %c1_56 = arith.constant 1 : index
    %c0_57 = arith.constant 0 : index
    %c0_58 = arith.constant 0 : index
    %142 = vector.load %arg7[%c1_56, %c0_57, %c0_58] : memref<2x32x32xf32, #tpu.memory_space<vmem>>, vector<1x32x32xf32>
    %143 = vector.shape_cast %142 : vector<1x32x32xf32> to vector<32x32xf32>
    %c1_59 = arith.constant 1 : index
    %c0_60 = arith.constant 0 : index
    %c0_61 = arith.constant 0 : index
    %144 = vector.load %arg8[%c1_59, %c0_60, %c0_61] : memref<2x32x64xf32, #tpu.memory_space<vmem>>, vector<1x32x64xf32>
    %145 = vector.shape_cast %144 : vector<1x32x64xf32> to vector<32x64xf32>
    %c1_62 = arith.constant 1 : index
    %c0_63 = arith.constant 0 : index
    %c0_64 = arith.constant 0 : index
    %146 = vector.load %arg9[%c1_62, %c0_63, %c0_64] : memref<2x64x32xf32, #tpu.memory_space<vmem>>, vector<1x64x32xf32>
    %147 = vector.shape_cast %146 : vector<1x64x32xf32> to vector<64x32xf32>
    %c1_65 = arith.constant 1 : index
    %c0_66 = arith.constant 0 : index
    %c0_67 = arith.constant 0 : index
    %148 = vector.load %arg4[%c1_65, %c0_66, %c0_67] : memref<2x5x32xf32, #tpu.memory_space<vmem>>, vector<1x5x32xf32>
    %149 = vector.shape_cast %148 : vector<1x5x32xf32> to vector<5x32xf32>
    %150 = vector.extract_strided_slice %149 {offsets = [0, 0], sizes = [1, 32], strides = [1, 1]} : vector<5x32xf32> to vector<1x32xf32>
    %151 = vector.extract_strided_slice %149 {offsets = [1, 0], sizes = [1, 32], strides = [1, 1]} : vector<5x32xf32> to vector<1x32xf32>
    %152 = vector.extract_strided_slice %149 {offsets = [2, 0], sizes = [1, 32], strides = [1, 1]} : vector<5x32xf32> to vector<1x32xf32>
    %153 = vector.extract_strided_slice %149 {offsets = [3, 0], sizes = [1, 32], strides = [1, 1]} : vector<5x32xf32> to vector<1x32xf32>
    %154 = vector.extract_strided_slice %149 {offsets = [4, 0], sizes = [1, 32], strides = [1, 1]} : vector<5x32xf32> to vector<1x32xf32>
    %c1_68 = arith.constant 1 : index
    %c0_69 = arith.constant 0 : index
    %c0_70 = arith.constant 0 : index
    %155 = vector.load %arg5[%c1_68, %c0_69, %c0_70] : memref<2x1x64xf32, #tpu.memory_space<vmem>>, vector<1x1x64xf32>
    %156 = vector.shape_cast %155 : vector<1x1x64xf32> to vector<1x64xf32>
    %cst_71 = arith.constant dense<0.000000e+00> : vector<16x96xf32>
    %157 = tpu.matmul %139, %141, %cst_71 {dimension_numbers = #tpu.dot_dimension_numbers<[1], [0], [0], [1], [0, 0, 1, 1], [], []>} : vector<16x32xf32>, vector<32x96xf32>, vector<16x96xf32> -> vector<16x96xf32>
    %158 = vector.shape_cast %157 : vector<16x96xf32> to vector<2x8x96xf32>
    %159 = vector.extract_strided_slice %158 {offsets = [0, 0, 0], sizes = [2, 8, 16], strides = [1, 1, 1]} : vector<2x8x96xf32> to vector<2x8x16xf32>
    %160 = vector.extract_strided_slice %158 {offsets = [0, 0, 32], sizes = [2, 8, 16], strides = [1, 1, 1]} : vector<2x8x96xf32> to vector<2x8x16xf32>
    %161 = vector.extract_strided_slice %158 {offsets = [0, 0, 64], sizes = [2, 8, 16], strides = [1, 1, 1]} : vector<2x8x96xf32> to vector<2x8x16xf32>
    "tpu.trace_start"() <{level = 10 : i32, message = "bqd,bkd->bqk"}> : () -> ()
    %cst_72 = arith.constant dense<0.000000e+00> : vector<2x8x8xf32>
    %162 = tpu.matmul %159, %160, %cst_72 {dimension_numbers = #tpu.dot_dimension_numbers<[2], [2], [1], [1], [0, 0, 0, 1, 1, 1], [0], [0]>} : vector<2x8x16xf32>, vector<2x8x16xf32>, vector<2x8x8xf32> -> vector<2x8x8xf32>
    "tpu.trace_stop"() : () -> ()
    %163 = vector.broadcast %0 : vector<2x1x8xf32> to vector<2x8x8xf32>
    %164 = arith.addf %162, %163 : vector<2x8x8xf32>
    %cst_73 = arith.constant dense<0xFF800000> : vector<2x8xf32>
    %165 = vector.multi_reduction <maximumf>, %164, %cst_73 [2] : vector<2x8x8xf32> to vector<2x8xf32>
    %166 = vector.shape_cast %165 : vector<2x8xf32> to vector<2x8x1xf32>
    %167 = vector.broadcast %166 : vector<2x8x1xf32> to vector<2x8x8xf32>
    %168 = arith.subf %164, %167 : vector<2x8x8xf32>
    %169 = math.exp %168 : vector<2x8x8xf32>
    %cst_74 = arith.constant dense<0.000000e+00> : vector<2x8xf32>
    %170 = vector.multi_reduction <add>, %169, %cst_74 [2] : vector<2x8x8xf32> to vector<2x8xf32>
    %171 = vector.shape_cast %170 : vector<2x8xf32> to vector<2x8x1xf32>
    %172 = vector.broadcast %171 : vector<2x8x1xf32> to vector<2x8x8xf32>
    %173 = arith.divf %169, %172 : vector<2x8x8xf32>
    "tpu.trace_start"() <{level = 10 : i32, message = "bqk,bkd->bqd"}> : () -> ()
    %cst_75 = arith.constant dense<0.000000e+00> : vector<2x8x16xf32>
    %174 = tpu.matmul %173, %161, %cst_75 {dimension_numbers = #tpu.dot_dimension_numbers<[2], [1], [1], [2], [0, 0, 0, 1, 1, 2], [0], [0]>} : vector<2x8x8xf32>, vector<2x8x16xf32>, vector<2x8x16xf32> -> vector<2x8x16xf32>
    "tpu.trace_stop"() : () -> ()
    %175 = vector.extract_strided_slice %158 {offsets = [0, 0, 16], sizes = [2, 8, 16], strides = [1, 1, 1]} : vector<2x8x96xf32> to vector<2x8x16xf32>
    %176 = vector.extract_strided_slice %158 {offsets = [0, 0, 48], sizes = [2, 8, 16], strides = [1, 1, 1]} : vector<2x8x96xf32> to vector<2x8x16xf32>
    %177 = vector.extract_strided_slice %158 {offsets = [0, 0, 80], sizes = [2, 8, 16], strides = [1, 1, 1]} : vector<2x8x96xf32> to vector<2x8x16xf32>
    "tpu.trace_start"() <{level = 10 : i32, message = "bqd,bkd->bqk"}> : () -> ()
    %cst_76 = arith.constant dense<0.000000e+00> : vector<2x8x8xf32>
    %178 = tpu.matmul %175, %176, %cst_76 {dimension_numbers = #tpu.dot_dimension_numbers<[2], [2], [1], [1], [0, 0, 0, 1, 1, 1], [0], [0]>} : vector<2x8x16xf32>, vector<2x8x16xf32>, vector<2x8x8xf32> -> vector<2x8x8xf32>
    "tpu.trace_stop"() : () -> ()
    %179 = vector.broadcast %0 : vector<2x1x8xf32> to vector<2x8x8xf32>
    %180 = arith.addf %178, %179 : vector<2x8x8xf32>
    %cst_77 = arith.constant dense<0xFF800000> : vector<2x8xf32>
    %181 = vector.multi_reduction <maximumf>, %180, %cst_77 [2] : vector<2x8x8xf32> to vector<2x8xf32>
    %182 = vector.shape_cast %181 : vector<2x8xf32> to vector<2x8x1xf32>
    %183 = vector.broadcast %182 : vector<2x8x1xf32> to vector<2x8x8xf32>
    %184 = arith.subf %180, %183 : vector<2x8x8xf32>
    %185 = math.exp %184 : vector<2x8x8xf32>
    %cst_78 = arith.constant dense<0.000000e+00> : vector<2x8xf32>
    %186 = vector.multi_reduction <add>, %185, %cst_78 [2] : vector<2x8x8xf32> to vector<2x8xf32>
    %187 = vector.shape_cast %186 : vector<2x8xf32> to vector<2x8x1xf32>
    %188 = vector.broadcast %187 : vector<2x8x1xf32> to vector<2x8x8xf32>
    %189 = arith.divf %185, %188 : vector<2x8x8xf32>
    "tpu.trace_start"() <{level = 10 : i32, message = "bqk,bkd->bqd"}> : () -> ()
    %cst_79 = arith.constant dense<0.000000e+00> : vector<2x8x16xf32>
    %190 = tpu.matmul %189, %177, %cst_79 {dimension_numbers = #tpu.dot_dimension_numbers<[2], [1], [1], [2], [0, 0, 0, 1, 1, 2], [0], [0]>} : vector<2x8x8xf32>, vector<2x8x16xf32>, vector<2x8x16xf32> -> vector<2x8x16xf32>
    "tpu.trace_stop"() : () -> ()
    %191 = tpu.concatenate %174, %190 in 2 : vector<2x8x16xf32>, vector<2x8x16xf32> -> vector<2x8x32xf32>
    %192 = vector.shape_cast %191 : vector<2x8x32xf32> to vector<16x32xf32>
    %cst_80 = arith.constant dense<0.000000e+00> : vector<16x32xf32>
    %193 = tpu.matmul %192, %143, %cst_80 {dimension_numbers = #tpu.dot_dimension_numbers<[1], [0], [0], [1], [0, 0, 1, 1], [], []>} : vector<16x32xf32>, vector<32x32xf32>, vector<16x32xf32> -> vector<16x32xf32>
    %194 = arith.addf %193, %139 : vector<16x32xf32>
    %cst_81 = arith.constant dense<0.000000e+00> : vector<16xf32>
    %195 = vector.multi_reduction <add>, %194, %cst_81 [1] : vector<16x32xf32> to vector<16xf32>
    %196 = vector.shape_cast %195 : vector<16xf32> to vector<16x1xf32>
    %cst_82 = arith.constant 3.200000e+01 : f32
    %197 = vector.broadcast %cst_82 : f32 to vector<16x1xf32>
    %198 = arith.divf %196, %197 : vector<16x1xf32>
    %199 = vector.broadcast %198 : vector<16x1xf32> to vector<16x32xf32>
    %200 = arith.subf %194, %199 : vector<16x32xf32>
    %201 = arith.mulf %200, %200 : vector<16x32xf32>
    %cst_83 = arith.constant dense<0.000000e+00> : vector<16xf32>
    %202 = vector.multi_reduction <add>, %201, %cst_83 [1] : vector<16x32xf32> to vector<16xf32>
    %203 = vector.shape_cast %202 : vector<16xf32> to vector<16x1xf32>
    %cst_84 = arith.constant 3.200000e+01 : f32
    %204 = vector.broadcast %cst_84 : f32 to vector<16x1xf32>
    %205 = arith.divf %203, %204 : vector<16x1xf32>
    %206 = vector.broadcast %198 : vector<16x1xf32> to vector<16x32xf32>
    %207 = arith.subf %194, %206 : vector<16x32xf32>
    %cst_85 = arith.constant 9.99999997E-7 : f32
    %208 = vector.broadcast %cst_85 : f32 to vector<16x1xf32>
    %209 = arith.addf %205, %208 : vector<16x1xf32>
    %210 = math.rsqrt %209 : vector<16x1xf32>
    %211 = vector.broadcast %210 : vector<16x1xf32> to vector<16x32xf32>
    %212 = arith.mulf %207, %211 : vector<16x32xf32>
    %213 = vector.broadcast %150 : vector<1x32xf32> to vector<16x32xf32>
    %214 = arith.mulf %212, %213 : vector<16x32xf32>
    %215 = vector.broadcast %151 : vector<1x32xf32> to vector<16x32xf32>
    %216 = arith.addf %214, %215 : vector<16x32xf32>
    %cst_86 = arith.constant dense<0.000000e+00> : vector<16x64xf32>
    %217 = tpu.matmul %216, %145, %cst_86 {dimension_numbers = #tpu.dot_dimension_numbers<[1], [0], [0], [1], [0, 0, 1, 1], [], []>} : vector<16x32xf32>, vector<32x64xf32>, vector<16x64xf32> -> vector<16x64xf32>
    %218 = vector.broadcast %156 : vector<1x64xf32> to vector<16x64xf32>
    %219 = arith.addf %217, %218 : vector<16x64xf32>
    %cst_87 = arith.constant 0.000000e+00 : f32
    %220 = vector.broadcast %cst_87 : f32 to vector<16x64xf32>
    %221 = arith.maximumf %219, %220 : vector<16x64xf32>
    %cst_88 = arith.constant dense<0.000000e+00> : vector<16x32xf32>
    %222 = tpu.matmul %221, %147, %cst_88 {dimension_numbers = #tpu.dot_dimension_numbers<[1], [0], [0], [1], [0, 0, 1, 1], [], []>} : vector<16x64xf32>, vector<64x32xf32>, vector<16x32xf32> -> vector<16x32xf32>
    %223 = vector.broadcast %154 : vector<1x32xf32> to vector<16x32xf32>
    %224 = arith.addf %222, %223 : vector<16x32xf32>
    %225 = arith.addf %224, %216 : vector<16x32xf32>
    %cst_89 = arith.constant dense<0.000000e+00> : vector<16xf32>
    %226 = vector.multi_reduction <add>, %225, %cst_89 [1] : vector<16x32xf32> to vector<16xf32>
    %227 = vector.shape_cast %226 : vector<16xf32> to vector<16x1xf32>
    %cst_90 = arith.constant 3.200000e+01 : f32
    %228 = vector.broadcast %cst_90 : f32 to vector<16x1xf32>
    %229 = arith.divf %227, %228 : vector<16x1xf32>
    %230 = vector.broadcast %229 : vector<16x1xf32> to vector<16x32xf32>
    %231 = arith.subf %225, %230 : vector<16x32xf32>
    %232 = arith.mulf %231, %231 : vector<16x32xf32>
    %cst_91 = arith.constant dense<0.000000e+00> : vector<16xf32>
    %233 = vector.multi_reduction <add>, %232, %cst_91 [1] : vector<16x32xf32> to vector<16xf32>
    %234 = vector.shape_cast %233 : vector<16xf32> to vector<16x1xf32>
    %cst_92 = arith.constant 3.200000e+01 : f32
    %235 = vector.broadcast %cst_92 : f32 to vector<16x1xf32>
    %236 = arith.divf %234, %235 : vector<16x1xf32>
    %237 = vector.broadcast %229 : vector<16x1xf32> to vector<16x32xf32>
    %238 = arith.subf %225, %237 : vector<16x32xf32>
    %cst_93 = arith.constant 9.99999997E-7 : f32
    %239 = vector.broadcast %cst_93 : f32 to vector<16x1xf32>
    %240 = arith.addf %236, %239 : vector<16x1xf32>
    %241 = math.rsqrt %240 : vector<16x1xf32>
    %242 = vector.broadcast %241 : vector<16x1xf32> to vector<16x32xf32>
    %243 = arith.mulf %238, %242 : vector<16x32xf32>
    %244 = vector.broadcast %152 : vector<1x32xf32> to vector<16x32xf32>
    %245 = arith.mulf %243, %244 : vector<16x32xf32>
    %246 = vector.broadcast %153 : vector<1x32xf32> to vector<16x32xf32>
    %247 = arith.addf %245, %246 : vector<16x32xf32>
    %248 = vector.shape_cast %247 : vector<16x32xf32> to vector<2x8x32xf32>
    %c0_94 = arith.constant 0 : index
    %c0_95 = arith.constant 0 : index
    %c0_96 = arith.constant 0 : index
    %249 = vector.load %arg10[%c0_94, %c0_95, %c0_96] : memref<2x8x32xf32, #tpu.memory_space<vmem>>, vector<2x8x32xf32>
    tpu.vector_store %arg10[%c0_94, %c0_95, %c0_96], %248 {strides = array<i32>} : memref<2x8x32xf32, #tpu.memory_space<vmem>>, vector<2x8x32xf32>,
    return
  }
}

</mosaic_0001>

<bundles_post_ra>
// kernel: encoder_forward.1
= control target key start
LH: loop header
LB: loop body
LE: loop exit
PB: predicated region body
PF: predicated region fallthrough
CT: control target
= control target key end

     0   :  { %vm44_vm0 = vcmask 261120   ;;  %s3323_s0 = inlined_call_operand.vmem [shape: f32[2,8,32], index: 0, kind: input, shape index: {}]   ;;  %s3324_s1 = inlined_call_operand.vmem [shape: f32[8,32], index: 1, kind: input, shape index: {}]   ;;  %s3325_s2 = inlined_call_operand.vmem [shape: f32[2,1,8], index: 2, kind: input, shape index: {}]   ;;  %s3326_s3 = inlined_call_operand.vmem [shape: f32[2,32], index: 3, kind: input, shape index: {}]   ;;  %s3327_s4 = inlined_call_operand.vmem [shape: f32[2,5,32], index: 4, kind: input, shape index: {}]   ;;  %s3328_s5 = inlined_call_operand.vmem [shape: f32[2,1,64], index: 5, kind: input, shape index: {}]   ;;  %s3329_s6 = inlined_call_operand.vmem [shape: f32[2,32,96], index: 6, kind: input, shape index: {}]   ;;  %s3330_s7 = inlined_call_operand.vmem [shape: f32[2,32,32], index: 7, kind: input, shape index: {}]   ;;  %s3331_s8 = inlined_call_operand.vmem [shape: f32[2,32,64], index: 8, kind: input, shape index: {}]   ;;  %s3332_s9 = inlined_call_operand.vmem [shape: f32[2,64,32], index: 9, kind: input, shape index: {}]   ;;  %s3333_s10 = inlined_call_operand.hbm [shape: f32[2,8,32], index: 10, kind: output, shape index: {}]  }
   0x1   :  { %v38_v0 = vld [vmem:[%s3323_s0] sm:$0xff]  ;;  %v39_v2 = vld [vmem:[%s3323_s0 + $0x8] sm:$0xff] }
   0x2   :  { %v40_v1 = vld [vmem:[%s3324_s1] sm:$0xff] }
   0x3   :  { %v41_v3 = vadd.f32 %v40_v1, %v38_v0  ;;  %v42_v4 = vadd.f32 %v40_v1, %v39_v2 }
   0x4   :  { %15 = vsyncpa [#allocation3], 0  ;;  %v84_v17 = vld [vmem:[%s3329_s6] sm:$0xff]  ;;  %v85_v18 = vld [vmem:[%s3329_s6 + $0x8] sm:$0xff]  ;;  %v72_v25 = vlaneseq  ;;  %v2836_v44 = vmov 0.0   ;;  %vm2837_vm1 = vmmov 0  }
   0x5   :  { %v45_v5 = vsel %vm44_vm0, %v41_v3, 0.0  ;;  %v48_v6 = vsel %vm44_vm0, %v42_v4, 0.0  ;;  %v86_v19 = vld [vmem:[%s3329_s6 + $0x10] sm:$0xff]  ;;  %v2669_v20 = vpack.c.bf16 %v85_v18, %v84_v17  ;;  %v87_v21 = vld [vmem:[%s3329_s6 + $0x18] sm:$0xff]  ;;  %v43_v32 = vld [vmem:[%s3326_s3] sm:$0x3]  ;;  %2506 = vmatprep.subr.mxu0 %v2836_v44  ;;  %2508 = vmatprep.mubr.msk.f32.mxu0 %vm2837_vm1, %v2836_v44 }
   0x6   :  { %46 = vadd.xlane.f32.xlu0 %v45_v5  ;;  %v2673_v22 = vpack.c.bf16 %v87_v21, %v86_v19  ;;  %v2927_v29 = vshrl.u32 %v72_v25, 7  ;;  %s2838_s3 = smov 96   ;;  %vm202_vm2 = vcmask 130048   ;;  %v2977_v49 = vld [vmem:[%s3325_s2] ss:$0 sm:$0xff]  ;;  %vm354_vm3 = vcmask 64512  }
   0x7   :  { %2670 = vmatprep.subr.bf16.mxu1 %v2669_v20  ;;  %v2983_v53 = vld [vmem:[%s3325_s2 + $0x1] ss:$0 sm:$0xff]  ;;  %s2839_s11 = smov 64   ;;  %s2840_s12 = smov 80   ;;  %vm1081_vm4 = vcmask 523264  }
   0x8   :  { %2672 = vmatpush3.bf16.msra.mxu1 %v2669_v20  ;;  %v2930_v31 = vsub.s32 0, %v2927_v29  ;;  %v2936_v33 = vsub.s32 1, %v2927_v29  ;;  %s2841_s2 = smov 112   ;;  %s2842_s13 = smov 48  }
   0x9   :  { %2674 = vmatprep.subr.bf16.mxu1 %v2673_v22  ;;  %s2843_s20 = smov 16  }
   0xa   :  { %49 = vadd.xlane.f32.xlu0 %v48_v6  ;;  %v75_v34 = vrot.slane %v43_v32, %v2930_v31  ;;  %v81_v37 = vrot.slane %v43_v32, %v2936_v33 }
   0xc   :  { %2676 = vmatpush3.bf16.msra.mxu1 %v2673_v22 }
   0xd   :  { %2496 = vmatprep.subr.mxu1 %v2836_v44 }
  0x93   :  { %v47_v7 = vpop.xlane.xlu0 %46 }
  0x94   :  { %v52_v8 = vmul.f32 0.03125, %v47_v7 }
  0x96   :  { %v54_v9 = vsub.f32 %v41_v3, %v52_v8 }
  0x97   :  { %v50_v10 = vpop.xlane.xlu0 %49 }
  0x98   :  { %v53_v11 = vmul.f32 0.03125, %v50_v10  ;;  %v56_v12 = vmul.f32 %v54_v9, %v54_v9 }
  0x9a   :  { %v55_v13 = vsub.f32 %v42_v4, %v53_v11  ;;  %v58_v14 = vsel %vm44_vm0, %v56_v12, 0.0 }
  0x9b   :  { %59 = vadd.xlane.f32.xlu1 %v58_v14 }
  0x9c   :  { %v57_v15 = vmul.f32 %v55_v13, %v55_v13 }
  0x9e   :  { %v61_v16 = vsel %vm44_vm0, %v57_v15, 0.0 }
  0x9f   :  { %62 = vadd.xlane.f32.xlu1 %v61_v16 }
 0x128   :  { %v60_v23 = vpop.xlane.xlu1 %59 }
 0x129   :  { %v64_v24 = vmul.f32 0.03125, %v60_v23 }
 0x12b   :  { %v66_v26 = vadd.f32 1e-06, %v64_v24 }
 0x12c   :  { %v63_v27 = vpop.xlane.xlu1 %62 }
 0x12d   :  { %2760 = vrsqrt.f32 %v66_v26  ;;  %v65_v28 = vmul.f32 0.03125, %v63_v27 }
 0x12f   :  { %v67_v30 = vadd.f32 1e-06, %v65_v28 }
 0x131   :  { %2762 = vrsqrt.f32 %v67_v30 }
 0x137   :  { %v2761_v35 = vpop.eup %2760 }
 0x138   :  { %v70_v36 = vmul.f32 %v2761_v35, %v54_v9 }
 0x13a   :  { %v76_v38 = vmul.f32 %v75_v34, %v70_v36 }
 0x13b   :  { %v2763_v39 = vpop.eup %2762 }
 0x13c   :  { %v71_v40 = vmul.f32 %v2763_v39, %v55_v13  ;;  %v2940_v41 = vadd.f32 %v81_v37, %v76_v38 }
 0x13e   :  { %v77_v42 = vmul.f32 %v75_v34, %v71_v40  ;;  %2493 = vmatprep.mubr.msk.f32.mxu1 %vm44_vm0, %v2940_v41 }
 0x140   :  { %v2944_v43 = vadd.f32 %v81_v37, %v77_v42 }
 0x142   :  { %2494 = vmatmul.mubr.msk.f32.vlgmr.msra.gmra.mrb[0].mxu1 %vm44_vm0, %v2944_v43 }
 0x143   :  { %2498 = vmatprep.mubr.msk.f32.mxu1 %vm2837_vm1, %v2836_v44 }
 0x215   :  { %v2954_v45 = vpop.f32.mrb[0].mxu1 }
 0x216   :  { %278 = vrot.lane.b32.xlu1 %v2954_v45, %s2838_s3  ;;  %v2958_v46 = vpop.f32.mrb[1].mxu1 }
 0x217   :  { %200 = vrot.lane.b32.xlu0 %v2958_v46, %s2838_s3 }
 0x288   :  { %v279_v48 = vpop.permute.xlu1 %278 }
 0x289   :  { %v201_v47 = vpop.permute.xlu0 %200 }
 0x28a   :  { %2497 = vmatpush3.xpose.msk.msra.mxu1 %vm202_vm2, %v201_v47 }
 0x28b   :  { %2501 = vmatprep.subr.mxu1 %v2836_v44 }
 0x28d   :  { %2499 = vmatmul.mubr.msk.f32.vlgmr.msra.gmra.mrb[2].mxu1 %vm202_vm2, %v2958_v46 }
 0x28e   :  { %2502 = vmatpush3.xpose.msk.msra.mxu1 %vm202_vm2, %v279_v48  ;;  %2503 = vmatprep.mubr.msk.f32.mxu1 %vm2837_vm1, %v2836_v44 }
 0x28f   :  { %2511 = vmatprep.subr.mxu1 %v2836_v44 }
 0x291   :  { %2504 = vmatmul.mubr.msk.f32.vlgmr.msra.gmra.mrb[4].mxu1 %vm202_vm2, %v2954_v45 }
 0x292   :  { %2513 = vmatprep.mubr.msk.f32.mxu1 %vm2837_vm1, %v2836_v44 }
 0x360   :  { %v273_v50 = vpop.f32.mrb[2].mxu1 }
 0x361   :  { %v274_v51 = vadd.f32 %v2977_v49, %v273_v50  ;;  %v2500_v52 = vpop.f32.mrb[3].mxu1 }
 0x363   :  { %v355_v54 = vsel %vm354_vm3, %v274_v51, -inf }
 0x364   :  { %v350_v55 = vpop.f32.mrb[4].mxu1  ;;  %356 = vmax.xlane.f32.xlu1 %v355_v54 }
 0x365   :  { %v351_v56 = vadd.f32 %v2983_v53, %v350_v55  ;;  %v2505_v57 = vpop.f32.mrb[5].mxu1 }
 0x367   :  { %v358_v58 = vsel %vm354_vm3, %v351_v56, -inf }
 0x368   :  { %359 = vmax.xlane.f32.xlu0 %v358_v58  ;;  %v90_v58 = vld [vmem:[%s3330_s7 + $0x10] sm:$0xff] }
 0x375   :  { %453 = vrot.lane.b32.xlu1 %v2954_v45, %s2839_s11 }
 0x379   :  { %531 = vrot.lane.b32.xlu1 %v2958_v46, %s2840_s12 }
 0x37d   :  { %609 = vrot.lane.b32.xlu1 %v2954_v45, %s2840_s12 }
 0x37e   :  { %377 = vrot.lane.b32.xlu0 %v2958_v46, %s2839_s11 }
 0x3f1   :  { %v357_v59 = vpop.xlane.xlu1 %356 }
 0x3f2   :  { %v361_v60 = vsub.f32 %v274_v51, %v357_v59  ;;  %v91_v59 = vld [vmem:[%s3330_s7 + $0x18] sm:$0xff] }
 0x3f4   :  { %v363_v61 = vmul.f32 1.442695, %v361_v60  ;;  %v2681_v60 = vpack.c.bf16 %v91_v59, %v90_v58  ;;  %v102_v59 = vld [vmem:[%s3332_s9 + $0x30] sm:$0xff] }
 0x3f5   :  { %v360_v62 = vpop.xlane.xlu0 %359  ;;  %v454_v63 = vpop.permute.xlu1 %453 }
 0x3f6   :  { %2764 = vpow2.f32 %v363_v61  ;;  %v362_v0 = vsub.f32 %v351_v56, %v360_v62  ;;  %2512 = vmatpush3.msra.mxu1 %v454_v63  ;;  %v88_v56 = vld [vmem:[%s3330_s7] sm:$0xff] }
 0x3f7   :  { %2521 = vmatprep.subr.mxu1 %v2836_v44 }
 0x3f8   :  { %v365_v1 = vmul.f32 1.442695, %v362_v0 }
 0x3f9   :  { %v378_v2 = vpop.permute.xlu0 %377  ;;  %v532_v7 = vpop.permute.xlu1 %531 }
 0x3fa   :  { %2766 = vpow2.f32 %v365_v1  ;;  %2507 = vmatpush3.msra.mxu0 %v378_v2 }
 0x3fb   :  { %2516 = vmatprep.subr.mxu0 %v2836_v44 }
 0x3fd   :  { %v610_v8 = vpop.permute.xlu1 %609 }
 0x400   :  { %v2765_v3 = vpop.eup %2764 }
 0x401   :  { %v367_v4 = vsel %vm354_vm3, %v2765_v3, 0.0 }
 0x402   :  { %368 = vadd.xlane.f32.xlu0 %v367_v4 }
 0x404   :  { %v2767_v5 = vpop.eup %2766 }
 0x405   :  { %v370_v6 = vsel %vm354_vm3, %v2767_v5, 0.0 }
 0x406   :  { %371 = vadd.xlane.f32.xlu1 %v370_v6 }
 0x417   :  { %607 = vrot.lane.b32.xlu1 %v2954_v45, %s2841_s2 }
 0x418   :  { %529 = vrot.lane.b32.xlu0 %v2958_v46, %s2841_s2 }
 0x48f   :  { %v369_v9 = vpop.xlane.xlu0 %368 }
 0x490   :  { %2768 = vrcp.f32 %v369_v9 }
 0x493   :  { %v372_v10 = vpop.xlane.xlu1 %371  ;;  %v530_v15 = vpop.permute.xlu0 %529 }
 0x494   :  { %2770 = vrcp.f32 %v372_v10 }
 0x497   :  { %v608_v16 = vpop.permute.xlu1 %607 }
 0x49a   :  { %v2769_v11 = vpop.eup %2768 }
 0x49b   :  { %v374_v12 = vmul.f32 %v2769_v11, %v2765_v3 }
 0x49d   :  { %2509 = vmatmul.mubr.msk.f32.vlgmr.msra.gmra.mrb[0].mxu0 %vm354_vm3, %v374_v12 }
 0x49e   :  { %v2771_v13 = vpop.eup %2770  ;;  %2517 = vmatpush3.xpose.msk.msra.mxu0 %vm202_vm2, %v532_v7  ;;  %2518 = vmatprep.mubr.msk.f32.mxu0 %vm2837_vm1, %v2836_v44 }
 0x49f   :  { %v376_v14 = vmul.f32 %v2771_v13, %v2767_v5  ;;  %2526 = vmatprep.subr.mxu0 %v2836_v44 }
 0x4a1   :  { %2514 = vmatmul.mubr.msk.f32.vlgmr.msra.gmra.mrb[6].mxu1 %vm354_vm3, %v376_v14  ;;  %2519 = vmatmul.mubr.msk.f32.vlgmr.msra.gmra.mrb[2].mxu0 %vm202_vm2, %v530_v15 }
 0x4a2   :  { %2522 = vmatpush3.xpose.msk.msra.mxu1 %vm202_vm2, %v610_v8  ;;  %2523 = vmatprep.mubr.msk.f32.mxu1 %vm2837_vm1, %v2836_v44 }
 0x4a3   :  { %2531 = vmatprep.subr.mxu1 %v2836_v44  ;;  %2528 = vmatprep.mubr.msk.f32.mxu0 %vm2837_vm1, %v2836_v44 }
 0x4a5   :  { %2524 = vmatmul.mubr.msk.f32.vlgmr.msra.gmra.mrb[8].mxu1 %vm202_vm2, %v608_v16 }
 0x4a6   :  { %2533 = vmatprep.mubr.msk.f32.mxu1 %vm2837_vm1, %v2836_v44 }
 0x570   :  { %v3020_v17 = vpop.f32.mrb[0].mxu0 }
 0x571   :  { %v2510_v18 = vpop.f32.mrb[1].mxu0 }
 0x574   :  { %v3022_v19 = vpop.f32.mrb[6].mxu1  ;;  %v603_v20 = vpop.f32.mrb[2].mxu0 }
 0x575   :  { %v604_v21 = vadd.f32 %v2977_v49, %v603_v20  ;;  %v2515_v22 = vpop.f32.mrb[7].mxu1  ;;  %v2520_v23 = vpop.f32.mrb[3].mxu0  ;;  %v93_v20 = vld [vmem:[%s3331_s8 + $0x8] sm:$0xff] }
 0x576   :  { %v94_v22 = vld [vmem:[%s3331_s8 + $0x10] sm:$0xff]  ;;  %v95_v23 = vld [vmem:[%s3331_s8 + $0x18] sm:$0xff] }
 0x577   :  { %v685_v24 = vsel %vm354_vm3, %v604_v21, -inf }
 0x578   :  { %686 = vmax.xlane.f32.xlu0 %v685_v24  ;;  %v681_v25 = vpop.f32.mrb[8].mxu1  ;;  %v2689_v24 = vpack.c.bf16 %v95_v23, %v94_v22  ;;  %v2354_v23 = vld [vmem:[%s3329_s6 + $0x20] sm:$0xff] }
 0x579   :  { %v682_v26 = vadd.f32 %v2983_v53, %v681_v25  ;;  %v2525_v27 = vpop.f32.mrb[9].mxu1  ;;  %v96_v25 = vld [vmem:[%s3332_s9] sm:$0xff] }
 0x57a   :  { %v98_v27 = vld [vmem:[%s3332_s9 + $0x10] sm:$0xff] }
 0x57b   :  { %v688_v28 = vsel %vm354_vm3, %v682_v26, -inf }
 0x57c   :  { %689 = vmax.xlane.f32.xlu1 %v688_v28 }
 0x58d   :  { %783 = vrot.lane.b32.xlu1 %v2954_v45, %s2842_s13 }
 0x605   :  { %v687_v30 = vpop.xlane.xlu0 %686 }
 0x606   :  { %v691_v32 = vsub.f32 %v604_v21, %v687_v30  ;;  %v99_v30 = vld [vmem:[%s3332_s9 + $0x18] sm:$0xff] }
 0x608   :  { %v693_v34 = vmul.f32 1.442695, %v691_v32  ;;  %v2697_v32 = vpack.c.bf16 %v99_v30, %v98_v27  ;;  %v2357_v27 = vld [vmem:[%s3329_s6 + $0x38] sm:$0xff] }
 0x609   :  { %v690_v35 = vpop.xlane.xlu1 %689 }
 0x60a   :  { %2772 = vpow2.f32 %v693_v34  ;;  %v692_v36 = vsub.f32 %v682_v26, %v690_v35  ;;  %v97_v26 = vld [vmem:[%s3332_s9 + $0x8] sm:$0xff]  ;;  %v100_v34 = vld [vmem:[%s3332_s9 + $0x20] sm:$0xff] }
 0x60b   :  { %v2693_v28 = vpack.c.bf16 %v97_v26, %v96_v25  ;;  %v101_v35 = vld [vmem:[%s3332_s9 + $0x28] sm:$0xff]  ;;  %v2356_v26 = vld [vmem:[%s3329_s6 + $0x30] sm:$0xff] }
 0x60c   :  { %v695_v37 = vmul.f32 1.442695, %v692_v36  ;;  %v2701_v36 = vpack.c.bf16 %v101_v35, %v100_v34 }
 0x60d   :  { %v784_v38 = vpop.permute.xlu1 %783 }
 0x60e   :  { %2774 = vpow2.f32 %v695_v37  ;;  %2532 = vmatpush3.msra.mxu1 %v784_v38 }
 0x614   :  { %v2773_v39 = vpop.eup %2772 }
 0x615   :  { %v697_v40 = vsel %vm354_vm3, %v2773_v39, 0.0 }
 0x616   :  { %698 = vadd.xlane.f32.xlu0 %v697_v40 }
 0x618   :  { %v2775_v42 = vpop.eup %2774 }
 0x619   :  { %v700_v47 = vsel %vm354_vm3, %v2775_v42, 0.0 }
 0x61a   :  { %701 = vadd.xlane.f32.xlu0 %v700_v47 }
 0x630   :  { %707 = vrot.lane.b32.xlu0 %v2958_v46, %s2842_s13  ;;  %v89_v46 = vld [vmem:[%s3330_s7 + $0x8] sm:$0xff] }
 0x631   :  { %v2677_v57 = vpack.c.bf16 %v89_v46, %v88_v56 }
 0x6a3   :  { %v699_v45 = vpop.xlane.xlu0 %698 }
 0x6a4   :  { %2776 = vrcp.f32 %v699_v45  ;;  %v3095_v45 = vld [vmem:[%s3327_s4] sm:$0x1f] }
 0x6a7   :  { %v702_v48 = vpop.xlane.xlu0 %701 }
 0x6a8   :  { %2778 = vrcp.f32 %v702_v48  ;;  %v979_v48 = vrot.slane %v3095_v45, %v2930_v31 }
 0x6ab   :  { %v708_v50 = vpop.permute.xlu0 %707 }
 0x6ac   :  { %2527 = vmatpush3.msra.mxu0 %v708_v50 }
 0x6ad   :  { %2678 = vmatprep.subr.bf16.mxu0 %v2677_v57 }
 0x6ae   :  { %v2777_v51 = vpop.eup %2776 }
 0x6af   :  { %v704_v52 = vmul.f32 %v2777_v51, %v2773_v39 }
 0x6b1   :  { %2529 = vmatmul.mubr.msk.f32.vlgmr.msra.gmra.mrb[4].mxu0 %vm354_vm3, %v704_v52  ;;  %v985_v52 = vrot.slane %v3095_v45, %v2936_v33 }
 0x6b2   :  { %v2779_v54 = vpop.eup %2778  ;;  %2680 = vmatpush3.bf16.msra.mxu0 %v2677_v57 }
 0x6b3   :  { %v706_v55 = vmul.f32 %v2779_v54, %v2775_v42  ;;  %2682 = vmatprep.subr.bf16.mxu0 %v2681_v60 }
 0x6b5   :  { %2534 = vmatmul.mubr.msk.f32.vlgmr.msra.gmra.mrb[10].mxu1 %vm354_vm3, %v706_v55 }
 0x6b6   :  { %2684 = vmatpush3.bf16.msra.mxu0 %v2681_v60  ;;  %v103_v60 = vld [vmem:[%s3332_s9 + $0x38] sm:$0xff] }
 0x6b7   :  { %2694 = vmatprep.subr.bf16.mxu0 %v2693_v28 }
 0x784   :  { %v779_v61 = vpop.f32.mrb[4].mxu0 }
 0x785   :  { %861 = vrot.lane.b32.xlu1 %v779_v61, %s2843_s20  ;;  %v2530_v62 = vpop.f32.mrb[5].mxu0  ;;  %v2705_v61 = vpack.c.bf16 %v103_v60, %v102_v59 }
 0x786   :  { %v2349_v62 = vld [vmem:[%s3328_s5] ss:$0 sm:$0xff] }
 0x788   :  { %v855_v63 = vpop.f32.mrb[10].mxu1 }
 0x789   :  { %863 = vrot.lane.b32.xlu1 %v855_v63, %s2843_s20  ;;  %v2535_v0 = vpop.f32.mrb[11].mxu1 }
 0x7f7   :  { %v862_v1 = vpop.permute.xlu1 %861 }
 0x7f8   :  { %v867_v2 = vsel %vm202_vm2, %v3020_v17, %v862_v1 }
 0x7f9   :  { %2544 = vmatprep.mubr.msk.f32.mxu0 %vm44_vm0, %v867_v2 }
 0x7fb   :  { %v864_v3 = vpop.permute.xlu1 %863 }
 0x7fc   :  { %v868_v4 = vsel %vm202_vm2, %v3022_v19, %v864_v3 }
 0x7fd   :  { %2545 = vmatmul.mubr.msk.f32.vlgmr.msra.gmra.mrb[6].mxu0 %vm44_vm0, %v868_v4 }
 0x7fe   :  { %2696 = vmatpush3.bf16.msra.mxu0 %v2693_v28  ;;  %v2713_v28 = vpack.c.bf16 %v2357_v27, %v2356_v26 }
 0x7ff   :  { %2698 = vmatprep.subr.bf16.mxu0 %v2697_v32 }
 0x802   :  { %2700 = vmatpush3.bf16.msra.mxu0 %v2697_v32 }
 0x803   :  { %2702 = vmatprep.subr.bf16.mxu0 %v2701_v36 }
 0x806   :  { %2704 = vmatpush3.bf16.msra.mxu0 %v2701_v36 }
 0x807   :  { %2706 = vmatprep.subr.bf16.mxu0 %v2705_v61 }
 0x80a   :  { %2708 = vmatpush3.bf16.msra.mxu0 %v2705_v61 }
 0x80b   :  { %2598 = vmatprep.subr.mxu0 %v2836_v44 }
 0x8d0   :  { %v2546_v5 = vpop.f32.mrb[6].mxu0 }
 0x8d1   :  { %v947_v6 = vadd.f32 %v2546_v5, %v2944_v43  ;;  %v941_v7 = vpop.f32.mrb[7].mxu0  ;;  %v1079_v5 = vsub.s32 4, %v2927_v29 }
 0x8d2   :  { %v942_v8 = vadd.f32 %v941_v7, %v2940_v41  ;;  %v92_v41 = vld [vmem:[%s3331_s8] sm:$0xff] }
 0x8d3   :  { %v953_v9 = vsel %vm44_vm0, %v947_v6, 0.0  ;;  %v2685_v21 = vpack.c.bf16 %v93_v20, %v92_v41 }
 0x8d4   :  { %954 = vadd.xlane.f32.xlu1 %v953_v9  ;;  %v950_v10 = vsel %vm44_vm0, %v942_v8, 0.0 }
 0x8d5   :  { %951 = vadd.xlane.f32.xlu0 %v950_v10  ;;  %2686 = vmatprep.subr.bf16.mxu1 %v2685_v21 }
 0x8d6   :  { %2688 = vmatpush3.bf16.msra.mxu1 %v2685_v21 }
 0x8d7   :  { %2690 = vmatprep.subr.bf16.mxu1 %v2689_v24 }
 0x8da   :  { %2692 = vmatpush3.bf16.msra.mxu1 %v2689_v24  ;;  %v2355_v24 = vld [vmem:[%s3329_s6 + $0x28] sm:$0xff] }
 0x8db   :  { %v2709_v25 = vpack.c.bf16 %v2355_v24, %v2354_v23 }
 0x8dd   :  { %2710 = vmatprep.subr.bf16.mxu1 %v2709_v25 }
 0x961   :  { %v955_v11 = vpop.xlane.xlu1 %954 }
 0x962   :  { %v957_v12 = vmul.f32 0.03125, %v955_v11  ;;  %v952_v13 = vpop.xlane.xlu0 %951 }
 0x963   :  { %v956_v14 = vmul.f32 0.03125, %v952_v13 }
 0x964   :  { %v959_v15 = vsub.f32 %v947_v6, %v957_v12  ;;  %v1080_v6 = vrot.slane %v3095_v45, %v1079_v5 }
 0x965   :  { %v958_v16 = vsub.f32 %v942_v8, %v956_v14 }
 0x966   :  { %v961_v19 = vmul.f32 %v959_v15, %v959_v15 }
 0x967   :  { %v960_v17 = vmul.f32 %v958_v16, %v958_v16 }
 0x968   :  { %v965_v43 = vsel %vm44_vm0, %v961_v19, 0.0 }
 0x969   :  { %v962_v18 = vsel %vm44_vm0, %v960_v17, 0.0 }
 0x96a   :  { %963 = vadd.xlane.f32.xlu0 %v962_v18 }
 0x96e   :  { %966 = vadd.xlane.f32.xlu0 %v965_v43 }
 0x9f7   :  { %v964_v37 = vpop.xlane.xlu0 %963 }
 0x9f8   :  { %v968_v38 = vmul.f32 0.03125, %v964_v37 }
 0x9fa   :  { %v970_v39 = vadd.f32 1e-06, %v968_v38  ;;  %v1193_v38 = vsub.s32 2, %v2927_v29 }
 0x9fb   :  { %v967_v40 = vpop.xlane.xlu0 %966 }
 0x9fc   :  { %2780 = vrsqrt.f32 %v970_v39  ;;  %v969_v42 = vmul.f32 0.03125, %v967_v40  ;;  %v1199_v39 = vsub.s32 3, %v2927_v29  ;;  %v1194_v40 = vrot.slane %v3095_v45, %v1193_v38 }
 0x9fe   :  { %v971_v47 = vadd.f32 1e-06, %v969_v42 }
 0xa00   :  { %2782 = vrsqrt.f32 %v971_v47 }
 0xa06   :  { %v2781_v50 = vpop.eup %2780 }
 0xa07   :  { %v974_v51 = vmul.f32 %v2781_v50, %v958_v16 }
 0xa09   :  { %v980_v54 = vmul.f32 %v979_v48, %v974_v51  ;;  %v1200_v51 = vrot.slane %v3095_v45, %v1199_v39 }
 0xa0a   :  { %v2783_v55 = vpop.eup %2782 }
 0xa0b   :  { %v975_v56 = vmul.f32 %v2783_v55, %v959_v15  ;;  %v986_v46 = vadd.f32 %v985_v52, %v980_v54 }
 0xa0d   :  { %v981_v57 = vmul.f32 %v979_v48, %v975_v56  ;;  %2555 = vmatprep.mubr.msk.f32.mxu1 %vm44_vm0, %v986_v46 }
 0xa0f   :  { %v987_v58 = vadd.f32 %v985_v52, %v981_v57 }
 0xa11   :  { %2556 = vmatmul.mubr.msk.f32.vlgmr.msra.gmra.mrb[12].mxu1 %vm44_vm0, %v987_v58 }
 0xa12   :  { %2712 = vmatpush3.bf16.msra.mxu1 %v2709_v25 }
 0xa13   :  { %2714 = vmatprep.subr.bf16.mxu1 %v2713_v28 }
 0xa16   :  { %2716 = vmatpush3.bf16.msra.mxu1 %v2713_v28 }
 0xa17   :  { %2588 = vmatprep.subr.mxu1 %v2836_v44 }
 0xae4   :  { %v2557_v63 = vpop.f32.mrb[12].mxu1 }
 0xae5   :  { %v1072_v0 = vadd.f32 %v2557_v63, %v2349_v62  ;;  %v1066_v1 = vpop.f32.mrb[13].mxu1 }
 0xae6   :  { %v1067_v2 = vadd.f32 %v2349_v62, %v1066_v1 }
 0xae7   :  { %v1076_v4 = vmax.f32 %v1072_v0, 0.0 }
 0xae8   :  { %v1075_v3 = vmax.f32 %v1067_v2, 0.0 }
 0xaea   :  { %2574 = vmatprep.mubr.msk.f32.mxu0 %vm1081_vm4, %v1075_v3 }
 0xaeb   :  { %2575 = vmatmul.mubr.msk.f32.vlgmr.msra.gmra.mrb[8].mxu0 %vm1081_vm4, %v1076_v4 }
 0xaec   :  { %2600 = vmatprep.mubr.msk.f32.mxu0 %vm2837_vm1, %v2836_v44 }
 0xbbe   :  { %v2576_v7 = vpop.f32.mrb[8].mxu0 }
 0xbbf   :  { %v1160_v8 = vadd.f32 %v2576_v7, %v1080_v6  ;;  %v1154_v9 = vpop.f32.mrb[9].mxu0 }
 0xbc0   :  { %v1155_v10 = vadd.f32 %v1154_v9, %v1080_v6 }
 0xbc1   :  { %v1164_v11 = vadd.f32 %v1160_v8, %v987_v58 }
 0xbc2   :  { %v1163_v12 = vadd.f32 %v1155_v10, %v986_v46 }
 0xbc3   :  { %v1168_v13 = vsel %vm44_vm0, %v1164_v11, 0.0 }
 0xbc4   :  { %1169 = vadd.xlane.f32.xlu1 %v1168_v13  ;;  %v1165_v14 = vsel %vm44_vm0, %v1163_v12, 0.0 }
 0xbc5   :  { %1166 = vadd.xlane.f32.xlu0 %v1165_v14 }
 0xc51   :  { %v1170_v15 = vpop.xlane.xlu1 %1169 }
 0xc52   :  { %v1172_v16 = vmul.f32 0.03125, %v1170_v15  ;;  %v1167_v17 = vpop.xlane.xlu0 %1166 }
 0xc53   :  { %v1171_v18 = vmul.f32 0.03125, %v1167_v17 }
 0xc54   :  { %v1174_v19 = vsub.f32 %v1164_v11, %v1172_v16 }
 0xc55   :  { %v1173_v43 = vsub.f32 %v1163_v12, %v1171_v18 }
 0xc56   :  { %v1176_v41 = vmul.f32 %v1174_v19, %v1174_v19 }
 0xc57   :  { %v1175_v20 = vmul.f32 %v1173_v43, %v1173_v43 }
 0xc58   :  { %v1180_v21 = vsel %vm44_vm0, %v1176_v41, 0.0 }
 0xc59   :  { %1181 = vadd.xlane.f32.xlu1 %v1180_v21  ;;  %v1177_v22 = vsel %vm44_vm0, %v1175_v20, 0.0 }
 0xc5a   :  { %1178 = vadd.xlane.f32.xlu0 %v1177_v22 }
 0xce6   :  { %v1182_v30 = vpop.xlane.xlu1 %1181 }
 0xce7   :  { %v1184_v32 = vmul.f32 0.03125, %v1182_v30  ;;  %v1179_v34 = vpop.xlane.xlu0 %1178 }
 0xce8   :  { %v1183_v35 = vmul.f32 0.03125, %v1179_v34 }
 0xce9   :  { %v1186_v36 = vadd.f32 1e-06, %v1184_v32 }
 0xcea   :  { %v1185_v37 = vadd.f32 1e-06, %v1183_v35 }
 0xceb   :  { %2784 = vrsqrt.f32 %v1186_v36 }
 0xcec   :  { %2786 = vrsqrt.f32 %v1185_v37 }
 0xcf5   :  { %v2785_v42 = vpop.eup %2784 }
 0xcf6   :  { %v2787_v47 = vpop.eup %2786  ;;  %v1190_v48 = vmul.f32 %v2785_v42, %v1174_v19 }
 0xcf7   :  { %v1189_v50 = vmul.f32 %v2787_v47, %v1173_v43 }
 0xcf8   :  { %v1196_v52 = vmul.f32 %v1194_v40, %v1190_v48 }
 0xcf9   :  { %v1195_v54 = vmul.f32 %v1194_v40, %v1189_v50 }
 0xcfa   :  { %v3148_v56 = vadd.f32 %v1200_v51, %v1196_v52 }
 0xcfb   :  { %v3146_v55 = vadd.f32 %v1200_v51, %v1195_v54 }
 0xcfd   :  { %2585 = vmatprep.mubr.msk.f32.mxu1 %vm44_vm0, %v3146_v55 }
 0xcfe   :  { %2586 = vmatmul.mubr.msk.f32.vlgmr.msra.gmra.mrb[14].mxu1 %vm44_vm0, %v3148_v56 }
 0xcff   :  { %2590 = vmatprep.mubr.msk.f32.mxu1 %vm2837_vm1, %v2836_v44 }
 0xdd1   :  { %v3156_v46 = vpop.f32.mrb[14].mxu1 }
 0xdd2   :  { %1390 = vrot.lane.b32.xlu1 %v3156_v46, %s2838_s3  ;;  %v3160_v45 = vpop.f32.mrb[15].mxu1 }
 0xdd3   :  { %1313 = vrot.lane.b32.xlu0 %v3160_v45, %s2838_s3 }
 0xe44   :  { %v1391_v58 = vpop.permute.xlu1 %1390 }
 0xe45   :  { %v1314_v57 = vpop.permute.xlu0 %1313 }
 0xe46   :  { %2589 = vmatpush3.xpose.msk.msra.mxu1 %vm202_vm2, %v1314_v57 }
 0xe47   :  { %2593 = vmatprep.subr.mxu1 %v2836_v44 }
 0xe49   :  { %2591 = vmatmul.mubr.msk.f32.vlgmr.msra.gmra.mrb[16].mxu1 %vm202_vm2, %v3160_v45 }
 0xe4a   :  { %2594 = vmatpush3.xpose.msk.msra.mxu1 %vm202_vm2, %v1391_v58  ;;  %2595 = vmatprep.mubr.msk.f32.mxu1 %vm2837_vm1, %v2836_v44 }
 0xe4b   :  { %2603 = vmatprep.subr.mxu1 %v2836_v44 }
 0xe4d   :  { %2596 = vmatmul.mubr.msk.f32.vlgmr.msra.gmra.mrb[18].mxu1 %vm202_vm2, %v3156_v46 }
 0xe4e   :  { %2605 = vmatprep.mubr.msk.f32.mxu1 %vm2837_vm1, %v2836_v44 }
 0xf1c   :  { %v1385_v59 = vpop.f32.mrb[16].mxu1 }
 0xf1d   :  { %v1386_v60 = vadd.f32 %v2977_v49, %v1385_v59  ;;  %v2592_v61 = vpop.f32.mrb[17].mxu1 }
 0xf1f   :  { %v1466_v62 = vsel %vm354_vm3, %v1386_v60, -inf }
 0xf20   :  { %1467 = vmax.xlane.f32.xlu1 %v1466_v62  ;;  %v1462_v63 = vpop.f32.mrb[18].mxu1 }
 0xf21   :  { %v1463_v0 = vadd.f32 %v2983_v53, %v1462_v63  ;;  %v2597_v1 = vpop.f32.mrb[19].mxu1 }
 0xf23   :  { %v1469_v2 = vsel %vm354_vm3, %v1463_v0, -inf }
 0xf24   :  { %1470 = vmax.xlane.f32.xlu0 %v1469_v2  ;;  %v2360_v2 = vld [vmem:[%s3330_s7 + $0x30] sm:$0xff] }
 0xf31   :  { %1564 = vrot.lane.b32.xlu1 %v3156_v46, %s2839_s11 }
 0xf35   :  { %1642 = vrot.lane.b32.xlu1 %v3160_v45, %s2840_s12 }
 0xf39   :  { %1720 = vrot.lane.b32.xlu1 %v3156_v46, %s2840_s12 }
 0xf3a   :  { %1488 = vrot.lane.b32.xlu0 %v3160_v45, %s2839_s11 }
 0xfad   :  { %v1468_v3 = vpop.xlane.xlu1 %1467 }
 0xfae   :  { %v1472_v4 = vsub.f32 %v1386_v60, %v1468_v3  ;;  %v2361_v3 = vld [vmem:[%s3330_s7 + $0x38] sm:$0xff] }
 0xfb0   :  { %v1474_v6 = vmul.f32 1.442695, %v1472_v4  ;;  %v2721_v4 = vpack.c.bf16 %v2361_v3, %v2360_v2  ;;  %v2372_v3 = vld [vmem:[%s3332_s9 + $0x70] sm:$0xff] }
 0xfb1   :  { %v1565_v7 = vpop.permute.xlu1 %1564  ;;  %v1471_v8 = vpop.xlane.xlu0 %1470 }
 0xfb2   :  { %2788 = vpow2.f32 %v1474_v6  ;;  %v1473_v9 = vsub.f32 %v1463_v0, %v1471_v8  ;;  %2604 = vmatpush3.msra.mxu1 %v1565_v7  ;;  %v2358_v0 = vld [vmem:[%s3330_s7 + $0x20] sm:$0xff] }
 0xfb3   :  { %2613 = vmatprep.subr.mxu1 %v2836_v44 }
 0xfb4   :  { %v1476_v10 = vmul.f32 1.442695, %v1473_v9 }
 0xfb5   :  { %v1489_v11 = vpop.permute.xlu0 %1488  ;;  %v1643_v16 = vpop.permute.xlu1 %1642 }
 0xfb6   :  { %2790 = vpow2.f32 %v1476_v10  ;;  %2599 = vmatpush3.msra.mxu0 %v1489_v11 }
 0xfb7   :  { %2608 = vmatprep.subr.mxu0 %v2836_v44 }
 0xfb9   :  { %v1721_v17 = vpop.permute.xlu1 %1720 }
 0xfbc   :  { %v2789_v12 = vpop.eup %2788 }
 0xfbd   :  { %v1478_v13 = vsel %vm354_vm3, %v2789_v12, 0.0 }
 0xfbe   :  { %1479 = vadd.xlane.f32.xlu0 %v1478_v13 }
 0xfc0   :  { %v2791_v14 = vpop.eup %2790 }
 0xfc1   :  { %v1481_v15 = vsel %vm354_vm3, %v2791_v14, 0.0 }
 0xfc2   :  { %1482 = vadd.xlane.f32.xlu1 %v1481_v15 }
 0xfd3   :  { %1718 = vrot.lane.b32.xlu1 %v3156_v46, %s2841_s2 }
 0xfd4   :  { %1640 = vrot.lane.b32.xlu0 %v3160_v45, %s2841_s2 }
0x104b   :  { %v1480_v18 = vpop.xlane.xlu0 %1479 }
0x104c   :  { %2792 = vrcp.f32 %v1480_v18 }
0x104f   :  { %v1483_v19 = vpop.xlane.xlu1 %1482  ;;  %v1641_v22 = vpop.permute.xlu0 %1640 }
0x1050   :  { %2794 = vrcp.f32 %v1483_v19 }
0x1053   :  { %v1719_v23 = vpop.permute.xlu1 %1718 }
0x1056   :  { %v2793_v43 = vpop.eup %2792 }
0x1057   :  { %v1485_v41 = vmul.f32 %v2793_v43, %v2789_v12 }
0x1059   :  { %2601 = vmatmul.mubr.msk.f32.vlgmr.msra.gmra.mrb[10].mxu0 %vm354_vm3, %v1485_v41 }
0x105a   :  { %v2795_v20 = vpop.eup %2794  ;;  %2609 = vmatpush3.xpose.msk.msra.mxu0 %vm202_vm2, %v1643_v16  ;;  %2610 = vmatprep.mubr.msk.f32.mxu0 %vm2837_vm1, %v2836_v44 }
0x105b   :  { %v1487_v21 = vmul.f32 %v2795_v20, %v2791_v14  ;;  %2618 = vmatprep.subr.mxu0 %v2836_v44 }
0x105d   :  { %2606 = vmatmul.mubr.msk.f32.vlgmr.msra.gmra.mrb[20].mxu1 %vm354_vm3, %v1487_v21  ;;  %2611 = vmatmul.mubr.msk.f32.vlgmr.msra.gmra.mrb[12].mxu0 %vm202_vm2, %v1641_v22 }
0x105e   :  { %2614 = vmatpush3.xpose.msk.msra.mxu1 %vm202_vm2, %v1721_v17  ;;  %2615 = vmatprep.mubr.msk.f32.mxu1 %vm2837_vm1, %v2836_v44 }
0x105f   :  { %2623 = vmatprep.subr.mxu1 %v2836_v44  ;;  %2620 = vmatprep.mubr.msk.f32.mxu0 %vm2837_vm1, %v2836_v44 }
0x1061   :  { %2616 = vmatmul.mubr.msk.f32.vlgmr.msra.gmra.mrb[22].mxu1 %vm202_vm2, %v1719_v23 }
0x1062   :  { %2625 = vmatprep.mubr.msk.f32.mxu1 %vm2837_vm1, %v2836_v44 }
0x112c   :  { %v1560_v24 = vpop.f32.mrb[10].mxu0 }
0x112d   :  { %v2602_v25 = vpop.f32.mrb[11].mxu0 }
0x1130   :  { %v3212_v26 = vpop.f32.mrb[20].mxu1  ;;  %v1714_v27 = vpop.f32.mrb[12].mxu0 }
0x1131   :  { %v1715_v28 = vadd.f32 %v2977_v49, %v1714_v27  ;;  %v2607_v30 = vpop.f32.mrb[21].mxu1  ;;  %v2612_v32 = vpop.f32.mrb[13].mxu0  ;;  %v2363_v27 = vld [vmem:[%s3331_s8 + $0x28] sm:$0xff] }
0x1132   :  { %v2364_v30 = vld [vmem:[%s3331_s8 + $0x30] sm:$0xff]  ;;  %v2365_v32 = vld [vmem:[%s3331_s8 + $0x38] sm:$0xff] }
0x1133   :  { %v1796_v34 = vsel %vm354_vm3, %v1715_v28, -inf }
0x1134   :  { %1797 = vmax.xlane.f32.xlu0 %v1796_v34  ;;  %v1792_v35 = vpop.f32.mrb[22].mxu1  ;;  %v2729_v34 = vpack.c.bf16 %v2365_v32, %v2364_v30 }
0x1135   :  { %v1793_v36 = vadd.f32 %v2983_v53, %v1792_v35  ;;  %v2617_v37 = vpop.f32.mrb[23].mxu1  ;;  %v2366_v35 = vld [vmem:[%s3332_s9 + $0x40] sm:$0xff] }
0x1136   :  { %v2368_v37 = vld [vmem:[%s3332_s9 + $0x50] sm:$0xff] }
0x1137   :  { %v1799_v40 = vsel %vm354_vm3, %v1793_v36, -inf }
0x1138   :  { %1800 = vmax.xlane.f32.xlu1 %v1799_v40 }
0x1149   :  { %1894 = vrot.lane.b32.xlu1 %v3156_v46, %s2842_s13 }
0x11c1   :  { %v1798_v44 = vpop.xlane.xlu0 %1797 }
0x11c2   :  { %v1802_v42 = vsub.f32 %v1715_v28, %v1798_v44  ;;  %v2369_v44 = vld [vmem:[%s3332_s9 + $0x58] sm:$0xff] }
0x11c4   :  { %v1804_v47 = vmul.f32 1.442695, %v1802_v42  ;;  %v2737_v42 = vpack.c.bf16 %v2369_v44, %v2368_v37 }
0x11c5   :  { %v1801_v48 = vpop.xlane.xlu1 %1800 }
0x11c6   :  { %2796 = vpow2.f32 %v1804_v47  ;;  %v1803_v49 = vsub.f32 %v1793_v36, %v1801_v48  ;;  %v2367_v36 = vld [vmem:[%s3332_s9 + $0x48] sm:$0xff]  ;;  %v2370_v47 = vld [vmem:[%s3332_s9 + $0x60] sm:$0xff] }
0x11c7   :  { %v2733_v40 = vpack.c.bf16 %v2367_v36, %v2366_v35  ;;  %v2371_v48 = vld [vmem:[%s3332_s9 + $0x68] sm:$0xff] }
0x11c8   :  { %v1806_v50 = vmul.f32 1.442695, %v1803_v49  ;;  %v2741_v49 = vpack.c.bf16 %v2371_v48, %v2370_v47 }
0x11c9   :  { %v1895_v51 = vpop.permute.xlu1 %1894 }
0x11ca   :  { %2798 = vpow2.f32 %v1806_v50  ;;  %2624 = vmatpush3.msra.mxu1 %v1895_v51 }
0x11d0   :  { %v2797_v52 = vpop.eup %2796 }
0x11d1   :  { %v1808_v53 = vsel %vm354_vm3, %v2797_v52, 0.0 }
0x11d2   :  { %1809 = vadd.xlane.f32.xlu0 %v1808_v53 }
0x11d4   :  { %v2799_v54 = vpop.eup %2798 }
0x11d5   :  { %v1811_v57 = vsel %vm354_vm3, %v2799_v54, 0.0 }
0x11d6   :  { %1812 = vadd.xlane.f32.xlu0 %v1811_v57 }
0x11ec   :  { %1818 = vrot.lane.b32.xlu0 %v3160_v45, %s2842_s13  ;;  %v2359_v45 = vld [vmem:[%s3330_s7 + $0x28] sm:$0xff] }
0x11ed   :  { %v2717_v1 = vpack.c.bf16 %v2359_v45, %v2358_v0 }
0x125f   :  { %v1810_v46 = vpop.xlane.xlu0 %1809 }
0x1260   :  { %2800 = vrcp.f32 %v1810_v46  ;;  %v2374_v46 = vld [vmem:[%s3327_s4 + $0x8] sm:$0x1f] }
0x1261   :  { %v2304_v35 = vrot.slane %v2374_v46, %v1193_v38  ;;  %v2310_v44 = vrot.slane %v2374_v46, %v1199_v39 }
0x1263   :  { %v1813_v58 = vpop.xlane.xlu0 %1812 }
0x1264   :  { %2802 = vrcp.f32 %v1813_v58  ;;  %v2090_v58 = vrot.slane %v2374_v46, %v2930_v31  ;;  %v2373_v31 = vld [vmem:[%s3332_s9 + $0x78] sm:$0xff] }
0x1267   :  { %v1819_v59 = vpop.permute.xlu0 %1818 }
0x1268   :  { %2619 = vmatpush3.msra.mxu0 %v1819_v59 }
0x1269   :  { %2718 = vmatprep.subr.bf16.mxu0 %v2717_v1 }
0x126a   :  { %v2801_v60 = vpop.eup %2800 }
0x126b   :  { %v1815_v61 = vmul.f32 %v2801_v60, %v2797_v52 }
0x126d   :  { %2621 = vmatmul.mubr.msk.f32.vlgmr.msra.gmra.mrb[14].mxu0 %vm354_vm3, %v1815_v61  ;;  %v2096_v61 = vrot.slane %v2374_v46, %v2936_v33  ;;  %v2392_v33 = vld [vmem:[%s3328_s5 + $0x1] ss:$0 sm:$0xff]  ;;  %s2844_s5 = smov [#allocation2]  }
0x126e   :  { %v2803_v62 = vpop.eup %2802  ;;  %2720 = vmatpush3.bf16.msra.mxu0 %v2717_v1  ;;  %s2320_s9 = sshll.u32 %s2844_s5, 4  ;;  %s2321_s9 = int_to_ptr.vmem [resolvable:$true] %s2320_s9 }
0x126f   :  { %v1817_v63 = vmul.f32 %v2803_v62, %v2799_v54  ;;  %2722 = vmatprep.subr.bf16.mxu0 %v2721_v4  ;;  %s2812_s7 = scalar_lea.vmem %s2321_s9, 256  ;;  %p2817_p1 = scmp.lt.s32.totalorder %s2321_s9, %s2321_s9 }
0x1270   :  { %p2813_p0 = scmp.ne.s32.totalorder %s2321_s9, %s2812_s7  ;;  %p2818_p2 = scmp.lt.s32.totalorder %s2812_s7, %s2812_s7 }
0x1271   :  { %2626 = vmatmul.mubr.msk.f32.vlgmr.msra.gmra.mrb[24].mxu1 %vm354_vm3, %v1817_v63 }
0x1272   :  { %2724 = vmatpush3.bf16.msra.mxu0 %v2721_v4  ;;  %v2745_v4 = vpack.c.bf16 %v2373_v31, %v2372_v3  ;;  %p2819_p3 = por %p2818_p2, %p2817_p1 }
0x1273   :  { %2734 = vmatprep.subr.bf16.mxu0 %v2733_v40 }
0x1274   :  { %p2820_p4 = pnand %p2819_p3, %p2813_p0 }
0x1340   :  { %v1890_v6 = vpop.f32.mrb[14].mxu0 }
0x1341   :  { %1972 = vrot.lane.b32.xlu1 %v1890_v6, %s2843_s20  ;;  %v2622_v7 = vpop.f32.mrb[15].mxu0 }
0x1344   :  { %v1966_v8 = vpop.f32.mrb[24].mxu1 }
0x1345   :  { %1974 = vrot.lane.b32.xlu1 %v1966_v8, %s2843_s20  ;;  %v2627_v9 = vpop.f32.mrb[25].mxu1 }
0x13b3   :  { %v1973_v10 = vpop.permute.xlu1 %1972 }
0x13b4   :  { %v1978_v11 = vsel %vm202_vm2, %v1560_v24, %v1973_v10 }
0x13b5   :  { %2636 = vmatprep.mubr.msk.f32.mxu0 %vm44_vm0, %v1978_v11 }
0x13b7   :  { %v1975_v12 = vpop.permute.xlu1 %1974 }
0x13b8   :  { %v1979_v13 = vsel %vm202_vm2, %v3212_v26, %v1975_v12  ;;  %v2191_v12 = vrot.slane %v2374_v46, %v1079_v5 }
0x13b9   :  { %2637 = vmatmul.mubr.msk.f32.vlgmr.msra.gmra.mrb[16].mxu0 %vm44_vm0, %v1979_v13 }
0x13ba   :  { %2736 = vmatpush3.bf16.msra.mxu0 %v2733_v40 }
0x13bb   :  { %2738 = vmatprep.subr.bf16.mxu0 %v2737_v42 }
0x13be   :  { %2740 = vmatpush3.bf16.msra.mxu0 %v2737_v42 }
0x13bf   :  { %2742 = vmatprep.subr.bf16.mxu0 %v2741_v49 }
0x13c2   :  { %2744 = vmatpush3.bf16.msra.mxu0 %v2741_v49 }
0x13c3   :  { %2746 = vmatprep.subr.bf16.mxu0 %v2745_v4 }
0x13c6   :  { %2748 = vmatpush3.bf16.msra.mxu0 %v2745_v4 }
0x148c   :  { %v2638_v14 = vpop.f32.mrb[16].mxu0 }
0x148d   :  { %v2058_v15 = vadd.f32 %v2638_v14, %v3148_v56  ;;  %v2052_v16 = vpop.f32.mrb[17].mxu0 }
0x148e   :  { %v2053_v17 = vadd.f32 %v2052_v16, %v3146_v55  ;;  %v2362_v55 = vld [vmem:[%s3331_s8 + $0x20] sm:$0xff] }
0x148f   :  { %v2064_v18 = vsel %vm44_vm0, %v2058_v15, 0.0  ;;  %v2725_v28 = vpack.c.bf16 %v2363_v27, %v2362_v55 }
0x1490   :  { %2065 = vadd.xlane.f32.xlu1 %v2064_v18  ;;  %v2061_v19 = vsel %vm44_vm0, %v2053_v17, 0.0 }
0x1491   :  { %2062 = vadd.xlane.f32.xlu0 %v2061_v19  ;;  %2726 = vmatprep.subr.bf16.mxu1 %v2725_v28 }
0x1492   :  { %2728 = vmatpush3.bf16.msra.mxu1 %v2725_v28 }
0x1493   :  { %2730 = vmatprep.subr.bf16.mxu1 %v2729_v34 }
0x1496   :  { %2732 = vmatpush3.bf16.msra.mxu1 %v2729_v34 }
0x151d   :  { %v2066_v43 = vpop.xlane.xlu1 %2065 }
0x151e   :  { %v2068_v41 = vmul.f32 0.03125, %v2066_v43  ;;  %v2063_v20 = vpop.xlane.xlu0 %2062 }
0x151f   :  { %v2067_v21 = vmul.f32 0.03125, %v2063_v20 }
0x1520   :  { %v2070_v22 = vsub.f32 %v2058_v15, %v2068_v41 }
0x1521   :  { %v2069_v23 = vsub.f32 %v2053_v17, %v2067_v21 }
0x1522   :  { %v2072_v26 = vmul.f32 %v2070_v22, %v2070_v22 }
0x1523   :  { %v2071_v24 = vmul.f32 %v2069_v23, %v2069_v23 }
0x1524   :  { %v2076_v56 = vsel %vm44_vm0, %v2072_v26, 0.0 }
0x1525   :  { %v2073_v25 = vsel %vm44_vm0, %v2071_v24, 0.0 }
0x1526   :  { %2074 = vadd.xlane.f32.xlu0 %v2073_v25 }
0x152a   :  { %2077 = vadd.xlane.f32.xlu0 %v2076_v56 }
0x15b3   :  { %v2075_v50 = vpop.xlane.xlu0 %2074 }
0x15b4   :  { %v2079_v51 = vmul.f32 0.03125, %v2075_v50 }
0x15b6   :  { %v2081_v52 = vadd.f32 1e-06, %v2079_v51 }
0x15b7   :  { %v2078_v53 = vpop.xlane.xlu0 %2077 }
0x15b8   :  { %2804 = vrsqrt.f32 %v2081_v52  ;;  %v2080_v54 = vmul.f32 0.03125, %v2078_v53 }
0x15ba   :  { %v2082_v57 = vadd.f32 1e-06, %v2080_v54 }
0x15bc   :  { %2806 = vrsqrt.f32 %v2082_v57 }
0x15c2   :  { %v2805_v59 = vpop.eup %2804 }
0x15c3   :  { %v2085_v60 = vmul.f32 %v2805_v59, %v2069_v23 }
0x15c5   :  { %v2091_v62 = vmul.f32 %v2090_v58, %v2085_v60 }
0x15c6   :  { %v2807_v63 = vpop.eup %2806 }
0x15c7   :  { %v2086_v0 = vmul.f32 %v2807_v63, %v2070_v22  ;;  %v2097_v45 = vadd.f32 %v2096_v61, %v2091_v62 }
0x15c9   :  { %v2092_v1 = vmul.f32 %v2090_v58, %v2086_v0  ;;  %2647 = vmatprep.mubr.msk.f32.mxu1 %vm44_vm0, %v2097_v45 }
0x15cb   :  { %v2098_v2 = vadd.f32 %v2096_v61, %v2092_v1 }
0x15cd   :  { %2648 = vmatmul.mubr.msk.f32.vlgmr.msra.gmra.mrb[26].mxu1 %vm44_vm0, %v2098_v2 }
0x16a0   :  { %v2649_v6 = vpop.f32.mrb[26].mxu1 }
0x16a1   :  { %v2183_v7 = vadd.f32 %v2649_v6, %v2392_v33  ;;  %v2177_v8 = vpop.f32.mrb[27].mxu1 }
0x16a2   :  { %v2178_v9 = vadd.f32 %v2392_v33, %v2177_v8 }
0x16a3   :  { %v2187_v11 = vmax.f32 %v2183_v7, 0.0 }
0x16a4   :  { %v2186_v10 = vmax.f32 %v2178_v9, 0.0 }
0x16a6   :  { %2666 = vmatprep.mubr.msk.f32.mxu0 %vm1081_vm4, %v2186_v10 }
0x16a7   :  { %2667 = vmatmul.mubr.msk.f32.vlgmr.msra.gmra.mrb[18].mxu0 %vm1081_vm4, %v2187_v11 }
0x177a   :  { %v2668_v13 = vpop.f32.mrb[18].mxu0 }
0x177b   :  { %v2270_v14 = vadd.f32 %v2668_v13, %v2191_v12  ;;  %v2264_v15 = vpop.f32.mrb[19].mxu0 }
0x177c   :  { %v2265_v16 = vadd.f32 %v2264_v15, %v2191_v12 }
0x177d   :  { %v2274_v17 = vadd.f32 %v2270_v14, %v2098_v2 }
0x177e   :  { %v2273_v18 = vadd.f32 %v2265_v16, %v2097_v45 }
0x177f   :  { %v2278_v19 = vsel %vm44_vm0, %v2274_v17, 0.0 }
0x1780   :  { %2279 = vadd.xlane.f32.xlu1 %v2278_v19  ;;  %v2275_v43 = vsel %vm44_vm0, %v2273_v18, 0.0 }
0x1781   :  { %2276 = vadd.xlane.f32.xlu0 %v2275_v43 }
0x180d   :  { %v2280_v41 = vpop.xlane.xlu1 %2279 }
0x180e   :  { %v2282_v20 = vmul.f32 0.03125, %v2280_v41  ;;  %v2277_v21 = vpop.xlane.xlu0 %2276 }
0x180f   :  { %v2281_v22 = vmul.f32 0.03125, %v2277_v21 }
0x1810   :  { %v2284_v23 = vsub.f32 %v2274_v17, %v2282_v20 }
0x1811   :  { %v2283_v24 = vsub.f32 %v2273_v18, %v2281_v22 }
0x1812   :  { %v2286_v25 = vmul.f32 %v2284_v23, %v2284_v23 }
0x1813   :  { %v2285_v5 = vmul.f32 %v2283_v24, %v2283_v24 }
0x1814   :  { %v2290_v26 = vsel %vm44_vm0, %v2286_v25, 0.0 }
0x1815   :  { %2291 = vadd.xlane.f32.xlu1 %v2290_v26  ;;  %v2287_v56 = vsel %vm44_vm0, %v2285_v5, 0.0 }
0x1816   :  { %2288 = vadd.xlane.f32.xlu0 %v2287_v56 }
0x18a2   :  { %v2292_v55 = vpop.xlane.xlu1 %2291 }
0x18a3   :  { %v2294_v27 = vmul.f32 0.03125, %v2292_v55  ;;  %v2289_v28 = vpop.xlane.xlu0 %2288 }
0x18a4   :  { %v2293_v30 = vmul.f32 0.03125, %v2289_v28 }
0x18a5   :  { %v2296_v32 = vadd.f32 1e-06, %v2294_v27 }
0x18a6   :  { %v2295_v34 = vadd.f32 1e-06, %v2293_v30 }
0x18a7   :  { %2808 = vrsqrt.f32 %v2296_v32 }
0x18a8   :  { %2810 = vrsqrt.f32 %v2295_v34 }
0x18b1   :  { %v2809_v36 = vpop.eup %2808 }
0x18b2   :  { %v2811_v37 = vpop.eup %2810  ;;  %v2300_v40 = vmul.f32 %v2809_v36, %v2284_v23 }
0x18b3   :  { %v2299_v42 = vmul.f32 %v2811_v37, %v2283_v24 }
0x18b4   :  { %v2306_v47 = vmul.f32 %v2304_v35, %v2300_v40 }
0x18b5   :  { %v2305_v48 = vmul.f32 %v2304_v35, %v2299_v42 }
0x18b6   :  { %v2312_v49 = vadd.f32 %v2310_v44, %v2306_v47 }
0x18b7   :  { %v2311_v50 = vadd.f32 %v2310_v44, %v2305_v48 }
0x18b8   :  { %2314 = vst.msk [vmem:[#allocation2 + $0x8] sm:$0xff] %vm44_vm0, %v2312_v49 }
0x18b9   :  { %2313 = vst.msk [vmem:[#allocation2] sm:$0xff] %vm44_vm0, %v2311_v50 }
0x18ba   :  { %2823 = shalt.err (!%p2820_p4)
}
0x18bb   :  { %s2824_s24 = scalar_lea.hbm %s3333_s10, 256 }
0x18bc   :  { %p2825_p5 = scmp.ne.s32.totalorder %s3333_s10, %s2824_s24  ;;  %p2828_p6 = scmp.lt.u32.totalorder %s2824_s24, %s3333_s10 }
0x18be   :  { %p2830_p7 = pnand %p2828_p6, %p2825_p5 }
0x18c0   :  { %2833 = shalt.err (!%p2830_p7)
}
0x18c1   :  { %s2845_s29 = smov 128   ;;  %s2846_s30 = smov 8  }
0x18c2   :  { %2326 = dma.vmem_to_hbm [thread:$0]  %s2321_s9, 256, %s3333_s10, [#allocation3], %s2845_s29, %s2845_s29, %s2846_s30  }
0x18c3   :  { %2834 = dma.done.wait [#allocation3], 256  }
0x18c4   :  { %2835 = vsyncadd [#allocation3], 4294967040 }
0x18c5   :  { %2330 = vsyncpa [#allocation3], 1 }

</bundles_post_ra>
